<compile_context>
chip_gen: v7x
topology: tpu7x:2x2x1
jax: 0.10.0
libtpu: 0.0.40
codegen_flags: <defaults>
</compile_context>

<pallas_src>
import functools
import math

import jax
import jax.numpy as jnp
from jax import lax
from jax.experimental import pallas as pl
from jax.experimental.pallas import tpu as pltpu


_MXU_DTYPE = jnp.bfloat16            # MXU operand dtype (accumulation stays f32)
_VMEM_LIMIT = 48 * 1024 * 1024       # explicit scoped-VMEM budget (fits v7x 64 MiB)


# ------------------------------ tiling helpers ------------------------------

def _tile(dim, cap, align):
    """Largest multiple of `align` that divides `dim` and is <= cap, else dim.

    Guarantees the resulting block dim is either the full array dim or a
    multiple of the required (8, 128) alignment, and always divides `dim`.
    """
    if dim <= cap:
        return dim
    t = (cap // align) * align
    while t >= align:
        if dim % t == 0:
            return t
        t -= align
    return dim


def _gelu_new(x):
    # GPT-2 "gelu_new" (tanh approximation), computed in f32.
    c = math.sqrt(2.0 / math.pi)
    return 0.5 * x * (1.0 + jnp.tanh(c * (x + 0.044715 * x * x * x)))


# ----------------------------- Pallas kernels ------------------------------

def _matmul_kernel(x_ref, w_ref, b_ref, *rest, act):
    """Tiled matmul with f32 accumulator, optional activation and fused residual."""
    if len(rest) == 3:
        r_ref, o_ref, acc_ref = rest
    else:
        r_ref = None
        o_ref, acc_ref = rest

    k = pl.program_id(2)

    @pl.when(k == 0)
    def _():
        acc_ref[...] = jnp.zeros_like(acc_ref)

    acc_ref[...] += jnp.dot(
        x_ref[...].astype(_MXU_DTYPE),
        w_ref[...].astype(_MXU_DTYPE),
        preferred_element_type=jnp.float32,
    )

    @pl.when(k == pl.num_programs(2) - 1)
    def _():
        y = acc_ref[...] + b_ref[...]
        if act == "gelu":
            y = _gelu_new(y)
        elif act == "relu":
            y = jnp.maximum(y, 0.0)
        if r_ref is not None:
            y = y + r_ref[...]
        o_ref[...] = y


def linear(x2d, w, b, act=None, residual=None, *,
           tm_cap=256, tn_cap=256, tk_cap=512):
    """y = act(x2d @ w + b) [+ residual]; all f32 in HBM, bf16 on the MXU."""
    M, K = x2d.shape
    _, N = w.shape
    tm = _tile(M, tm_cap, 8)
    tn = _tile(N, tn_cap, 128)
    tk = _tile(K, tk_cap, 128)
    grid = (M // tm, N // tn, K // tk)

    in_specs = [
        pl.BlockSpec((tm, tk), lambda i, j, k: (i, k)),
        pl.BlockSpec((tk, tn), lambda i, j, k: (k, j)),
        pl.BlockSpec((1, tn), lambda i, j, k: (0, j)),
    ]
    inputs = [x2d, w, b.reshape(1, N)]
    if residual is not None:
        in_specs.append(pl.BlockSpec((tm, tn), lambda i, j, k: (i, j)))
        inputs.append(residual)

    return pl.pallas_call(
        functools.partial(_matmul_kernel, act=act),
        out_shape=jax.ShapeDtypeStruct((M, N), jnp.float32),
        grid=grid,
        in_specs=in_specs,
        out_specs=pl.BlockSpec((tm, tn), lambda i, j, k: (i, j)),
        scratch_shapes=[pltpu.VMEM((tm, tn), jnp.float32)],
        compiler_params=pltpu.CompilerParams(
            dimension_semantics=("parallel", "parallel", "arbitrary"),
            vmem_limit_bytes=_VMEM_LIMIT),
    )(*inputs)


def _ln_linear_kernel(x_ref, g_ref, bln_ref, w_ref, b_ref, o_ref, *, act, eps):
    """LayerNorm (f32 statistics) fused into the following projection."""
    x = x_ref[...]
    mu = jnp.mean(x, axis=-1, keepdims=True)
    var = jnp.mean(jnp.square(x - mu), axis=-1, keepdims=True)
    xn = (x - mu) * lax.rsqrt(var + eps) * g_ref[...] + bln_ref[...]
    y = jnp.dot(xn.astype(_MXU_DTYPE), w_ref[...].astype(_MXU_DTYPE),
                preferred_element_type=jnp.float32) + b_ref[...]
    if act == "gelu":
        y = _gelu_new(y)
    elif act == "relu":
        y = jnp.maximum(y, 0.0)
    o_ref[...] = y


def ln_linear(x2d, g, bln, w, b, act=None, eps=1e-5, *, tm_cap=256, tn_cap=512):
    """y = act(LayerNorm(x2d) @ w + b). Full K kept per tile (LN needs full row)."""
    M, K = x2d.shape
    _, N = w.shape
    tm = _tile(M, tm_cap, 8)
    tn = _tile(N, tn_cap, 128)
    grid = (M // tm, N // tn)

    return pl.pallas_call(
        functools.partial(_ln_linear_kernel, act=act, eps=eps),
        out_shape=jax.ShapeDtypeStruct((M, N), jnp.float32),
        grid=grid,
        in_specs=[
            pl.BlockSpec((tm, K), lambda i, j: (i, 0)),
            pl.BlockSpec((1, K), lambda i, j: (0, 0)),
            pl.BlockSpec((1, K), lambda i, j: (0, 0)),
            pl.BlockSpec((K, tn), lambda i, j: (0, j)),
            pl.BlockSpec((1, tn), lambda i, j: (0, j)),
        ],
        out_specs=pl.BlockSpec((tm, tn), lambda i, j: (i, j)),
        compiler_params=pltpu.CompilerParams(
            dimension_semantics=("parallel", "parallel"),
            vmem_limit_bytes=_VMEM_LIMIT),
    )(x2d, g.reshape(1, K), bln.reshape(1, K), w, b.reshape(1, N))


def _layernorm_kernel(x_ref, g_ref, b_ref, o_ref, *, eps):
    x = x_ref[...]
    mu = jnp.mean(x, axis=-1, keepdims=True)
    var = jnp.mean(jnp.square(x - mu), axis=-1, keepdims=True)
    o_ref[...] = (x - mu) * lax.rsqrt(var + eps) * g_ref[...] + b_ref[...]


def layernorm(x2d, g, b, eps=1e-5, *, tm_cap=512):
    """Standalone LayerNorm (used where the normed value itself must be kept)."""
    M, E = x2d.shape
    tm = _tile(M, tm_cap, 8)
    return pl.pallas_call(
        functools.partial(_layernorm_kernel, eps=eps),
        out_shape=jax.ShapeDtypeStruct((M, E), jnp.float32),
        grid=(M // tm,),
        in_specs=[
            pl.BlockSpec((tm, E), lambda i: (i, 0)),
            pl.BlockSpec((1, E), lambda i: (0, 0)),
            pl.BlockSpec((1, E), lambda i: (0, 0)),
        ],
        out_specs=pl.BlockSpec((tm, E), lambda i: (i, 0)),
        compiler_params=pltpu.CompilerParams(
            dimension_semantics=("parallel",),
            vmem_limit_bytes=_VMEM_LIMIT),
    )(x2d, g.reshape(1, E), b.reshape(1, E))


def _attention_kernel(qkv_ref, o_ref, *, num_heads, head_dim, scale, causal):
    """All heads of one batch element, reading the fused (T, 3E) QKV slab."""
    x = qkv_ref[0]                               # (T, 3E) f32
    T = x.shape[0]
    E = num_heads * head_dim

    if causal:
        row = lax.broadcasted_iota(jnp.int32, (T, T), 0)
        col = lax.broadcasted_iota(jnp.int32, (T, T), 1)
        mask = col <= row

    outs = []
    for h in range(num_heads):                   # static unrolled head loop
        q = x[:, h * head_dim:(h + 1) * head_dim]
        k = x[:, E + h * head_dim:E + (h + 1) * head_dim]
        v = x[:, 2 * E + h * head_dim:2 * E + (h + 1) * head_dim]
        # scores = q @ k^T (contract head_dim), f32 accumulation on the MXU.
        s = lax.dot_general(q.astype(_MXU_DTYPE), k.astype(_MXU_DTYPE),
                            (((1,), (1,)), ((), ())),
                            preferred_element_type=jnp.float32) * scale
        if causal:
            s = jnp.where(mask, s, -1e30)
        m = jnp.max(s, axis=-1, keepdims=True)
        p = jnp.exp(s - m)
        p = p * pl.reciprocal(jnp.sum(p, axis=-1, keepdims=True), approx=True)
        outs.append(jnp.dot(p.astype(_MXU_DTYPE), v.astype(_MXU_DTYPE),
                            preferred_element_type=jnp.float32))
    # Lane-dense (T, E) store instead of per-head lane-sparse writes.
    o_ref[0] = jnp.concatenate(outs, axis=-1)


def attention(qkv, *, num_heads, causal):
    """qkv: (G, T, 3E) fused QKV slab; attention over T per g; returns (G, T, E)."""
    G, T, three_e = qkv.shape
    E = three_e // 3
    head_dim = E // num_heads
    scale = 1.0 / math.sqrt(head_dim)
    return pl.pallas_call(
        functools.partial(_attention_kernel, num_heads=num_heads,
                          head_dim=head_dim, scale=scale, causal=causal),
        out_shape=jax.ShapeDtypeStruct((G, T, E), jnp.float32),
        grid=(G,),
        in_specs=[pl.BlockSpec((1, T, three_e), lambda g: (g, 0, 0))],
        out_specs=pl.BlockSpec((1, T, E), lambda g: (g, 0, 0)),
        compiler_params=pltpu.CompilerParams(
            dimension_semantics=("parallel",),
            vmem_limit_bytes=_VMEM_LIMIT),
    )(qkv)


# ------------------------------ model wrapper -------------------------------

def init_params(key, cfg):
    E = cfg["embed_dim"]
    V = cfg["vocab_size"]
    P = cfg["max_pos"]
    FFg = 4 * E                 # GPT-2 MLP width
    FFf = cfg["future_ffn"]     # TransformerEncoderLayer dim_feedforward (scaled down)
    keys = iter(jax.random.split(key, 256))

    def w(shape, std=0.02):
        return (std * jax.random.normal(next(keys), shape)).astype(jnp.float32)

    def zeros(shape):
        return jnp.zeros(shape, jnp.float32)

    def ones(shape):
        return jnp.ones(shape, jnp.float32)

    params = {
        "wte": w((V, E)),
        "wpe": w((P, E), std=0.01),
        "lnf_g": ones((E,)), "lnf_b": zeros((E,)),
        "gpt2_layers": [],
        "future_layers": [],
        "fc_out_w": w((E, E)), "fc_out_b": zeros((E,)),
    }
    for _ in range(cfg["gpt2_layers"]):
        params["gpt2_layers"].append({
            "ln1_g": ones((E,)), "ln1_b": zeros((E,)),
            "w_qkv": w((E, 3 * E)), "b_qkv": zeros((3 * E,)),
            "w_attn_o": w((E, E)), "b_attn_o": zeros((E,)),
            "ln2_g": ones((E,)), "ln2_b": zeros((E,)),
            "w_fc": w((E, FFg)), "b_fc": zeros((FFg,)),
            "w_mlp_o": w((FFg, E)), "b_mlp_o": zeros((E,)),
        })
    for _ in range(cfg["future_layers"]):
        params["future_layers"].append({
            "w_in": w((E, 3 * E)), "b_in": zeros((3 * E,)),
            "w_out": w((E, E)), "b_out": zeros((E,)),
            "ln1_g": ones((E,)), "ln1_b": zeros((E,)),
            "w_ff1": w((E, FFf)), "b_ff1": zeros((FFf,)),
            "w_ff2": w((FFf, E)), "b_ff2": zeros((E,)),
            "ln2_g": ones((E,)), "ln2_b": zeros((E,)),
        })
    return params


def gpt2_with_future_forward(params, input_ids, cfg):
    """Returns (future_features, transformer_output) — the labels=None path."""
    B, S = input_ids.shape
    E, H = cfg["embed_dim"], cfg["num_heads"]

    # ---------------- GPT-2 backbone (pre-norm blocks + final ln_f) ----------
    h = params["wte"][input_ids] + params["wpe"][:S][None, :, :]     # (B, S, E)
    h2d = h.reshape(B * S, E)

    for p in params["gpt2_layers"]:
        # ln1 fused into the QKV projection (one pallas_call)
        qkv = ln_linear(h2d, p["ln1_g"], p["ln1_b"], p["w_qkv"], p["b_qkv"])
        # attention consumes the fused QKV slab directly (no split/transpose)
        a = attention(qkv.reshape(B, S, 3 * E), num_heads=H, causal=True)
        # output projection with residual add fused into the writeback
        h2d = linear(a.reshape(B * S, E), p["w_attn_o"], p["b_attn_o"],
                     residual=h2d)
        # ln2 fused into the MLP up-projection (gelu_new), then down-proj + residual
        f = ln_linear(h2d, p["ln2_g"], p["ln2_b"], p["w_fc"], p["b_fc"], act="gelu")
        h2d = linear(f, p["w_mlp_o"], p["b_mlp_o"], residual=h2d)

    # hidden_states[-1] of HF GPT-2 includes the final LayerNorm
    current2d = layernorm(h2d, params["lnf_g"], params["lnf_b"])     # (B*S, E)

    # ---------------- FutureTransformerEncoder (post-norm, ReLU) -------------
    # batch_first=False semantics: attention over axis 0 (length B) of `current`.
    L, N = B, S
    x2d = current2d
    for p in params["future_layers"]:
        qkv = linear(x2d, p["w_in"], p["b_in"])                       # (L*N, 3E)
        # attention axis is L: rearrange so the attention axis sits in position 1
        qkv_nl = qkv.reshape(L, N, 3 * E).transpose(1, 0, 2)          # (N, L, 3E)
        a = attention(qkv_nl, num_heads=H, causal=False)              # (N, L, E)
        a2d = a.transpose(1, 0, 2).reshape(L * N, E)
        t = linear(a2d, p["w_out"], p["b_out"], residual=x2d)         # x + sa(x)
        y = layernorm(t, p["ln1_g"], p["ln1_b"])                      # norm1
        f = linear(y, p["w_ff1"], p["b_ff1"], act="relu")
        t2 = linear(f, p["w_ff2"], p["b_ff2"], residual=y)            # y + ff(y)
        x2d = layernorm(t2, p["ln2_g"], p["ln2_b"])                   # norm2

    transformer_output = x2d.reshape(L, N, E)
    future_features = linear(x2d, params["fc_out_w"],
                             params["fc_out_b"]).reshape(L, N, E)
    return future_features, transformer_output


# ----------------------------------- main -----------------------------------

if __name__ == "__main__":
    cfg = dict(
        embed_dim=32,      # original: 768
        num_heads=4,       # original: 12
        gpt2_layers=2,     # original: 12
        future_layers=2,   # original: 12
        vocab_size=64,     # original: 50257
        max_pos=32,        # original: 1024
        future_ffn=64,     # original default dim_feedforward: 2048
    )
    key = jax.random.PRNGKey(0)
    pkey, ikey = jax.random.split(key)
    params = init_params(pkey, cfg)

    B, S = 2, 8
    input_ids = jax.random.randint(ikey, (B, S), 0, cfg["vocab_size"],
                                   dtype=jnp.int32)

    fwd = jax.jit(functools.partial(gpt2_with_future_forward, cfg=cfg))
    future_features, transformer_output = fwd(params, input_ids)
    jax.block_until_ready((future_features, transformer_output))

    assert future_features.shape == (B, S, cfg["embed_dim"])
    assert transformer_output.shape == (B, S, cfg["embed_dim"])
    assert future_features.dtype == jnp.float32
    assert bool(jnp.all(jnp.isfinite(future_features)))
    assert bool(jnp.all(jnp.isfinite(transformer_output)))
    print("KERNEL_OK")
</pallas_src>

<mosaic_0001>
module attributes {stable_mosaic.version = 11 : i64} {
  func.func @_ln_linear_kernel(%arg0: i32, %arg1: i32, %arg2: memref<16x32xf32, #tpu.memory_space<vmem>>, %arg3: memref<1x32xf32, #tpu.memory_space<vmem>>, %arg4: memref<1x32xf32, #tpu.memory_space<vmem>>, %arg5: memref<32x96xf32, #tpu.memory_space<vmem>>, %arg6: memref<1x96xf32, #tpu.memory_space<vmem>>, %arg7: memref<16x96xf32, #tpu.memory_space<vmem>>) attributes {dimension_semantics = [#tpu.dimension_semantics<parallel>, #tpu.dimension_semantics<parallel>], iteration_bounds = array<i64: 1, 1>, scalar_prefetch = 0 : i64, scratch_operands = 0 : i64, tpu.core_type = #tpu.core_type<tc>, window_params = [{transform_indices = @transform_0, window_bounds = array<i64: 16, 32>}, {pipeline_mode = #tpu.pipeline_mode<synchronous>, transform_indices = @transform_1, window_bounds = array<i64: 1, 32>}, {pipeline_mode = #tpu.pipeline_mode<synchronous>, transform_indices = @transform_2, window_bounds = array<i64: 1, 32>}, {transform_indices = @transform_3, window_bounds = array<i64: 32, 96>}, {transform_indices = @transform_4, window_bounds = array<i64: 1, 96>}, {transform_indices = @transform_5, window_bounds = array<i64: 16, 96>}]} {
    %c0 = arith.constant 0 : index
    %c0_0 = arith.constant 0 : index
    %0 = vector.load %arg2[%c0, %c0_0] : memref<16x32xf32, #tpu.memory_space<vmem>>, vector<16x32xf32>
    %cst = arith.constant dense<0.000000e+00> : vector<16xf32>
    %1 = vector.multi_reduction <add>, %0, %cst [1] : vector<16x32xf32> to vector<16xf32>
    %2 = vector.shape_cast %1 : vector<16xf32> to vector<16x1xf32>
    %cst_1 = arith.constant 3.200000e+01 : f32
    %3 = vector.broadcast %cst_1 : f32 to vector<16x1xf32>
    %4 = arith.divf %2, %3 : vector<16x1xf32>
    %5 = vector.broadcast %4 : vector<16x1xf32> to vector<16x32xf32>
    %6 = arith.subf %0, %5 : vector<16x32xf32>
    %7 = arith.mulf %6, %6 : vector<16x32xf32>
    %cst_2 = arith.constant dense<0.000000e+00> : vector<16xf32>
    %8 = vector.multi_reduction <add>, %7, %cst_2 [1] : vector<16x32xf32> to vector<16xf32>
    %9 = vector.shape_cast %8 : vector<16xf32> to vector<16x1xf32>
    %cst_3 = arith.constant 3.200000e+01 : f32
    %10 = vector.broadcast %cst_3 : f32 to vector<16x1xf32>
    %11 = arith.divf %9, %10 : vector<16x1xf32>
    %12 = vector.broadcast %4 : vector<16x1xf32> to vector<16x32xf32>
    %13 = arith.subf %0, %12 : vector<16x32xf32>
    %cst_4 = arith.constant 9.99999974E-6 : f32
    %14 = vector.broadcast %cst_4 : f32 to vector<16x1xf32>
    %15 = arith.addf %11, %14 : vector<16x1xf32>
    %16 = math.rsqrt %15 : vector<16x1xf32>
    %17 = vector.broadcast %16 : vector<16x1xf32> to vector<16x32xf32>
    %18 = arith.mulf %13, %17 : vector<16x32xf32>
    %c0_5 = arith.constant 0 : index
    %c0_6 = arith.constant 0 : index
    %19 = vector.load %arg3[%c0_5, %c0_6] : memref<1x32xf32, #tpu.memory_space<vmem>>, vector<1x32xf32>
    %20 = vector.broadcast %19 : vector<1x32xf32> to vector<16x32xf32>
    %21 = arith.mulf %18, %20 : vector<16x32xf32>
    %c0_7 = arith.constant 0 : index
    %c0_8 = arith.constant 0 : index
    %22 = vector.load %arg4[%c0_7, %c0_8] : memref<1x32xf32, #tpu.memory_space<vmem>>, vector<1x32xf32>
    %23 = vector.broadcast %22 : vector<1x32xf32> to vector<16x32xf32>
    %24 = arith.addf %21, %23 : vector<16x32xf32>
    %25 = arith.truncf %24 : vector<16x32xf32> to vector<16x32xbf16>
    %c0_9 = arith.constant 0 : index
    %c0_10 = arith.constant 0 : index
    %26 = vector.load %arg5[%c0_9, %c0_10] : memref<32x96xf32, #tpu.memory_space<vmem>>, vector<32x96xf32>
    %27 = arith.truncf %26 : vector<32x96xf32> to vector<32x96xbf16>
    %cst_11 = arith.constant dense<0.000000e+00> : vector<16x96xf32>
    %28 = tpu.matmul %25, %27, %cst_11 {dimension_numbers = #tpu.dot_dimension_numbers<[1], [0], [0], [1], [0, 0, 1, 1], [], []>} : vector<16x32xbf16>, vector<32x96xbf16>, vector<16x96xf32> -> vector<16x96xf32>
    %c0_12 = arith.constant 0 : index
    %c0_13 = arith.constant 0 : index
    %29 = vector.load %arg6[%c0_12, %c0_13] : memref<1x96xf32, #tpu.memory_space<vmem>>, vector<1x96xf32>
    %30 = vector.broadcast %29 : vector<1x96xf32> to vector<16x96xf32>
    %31 = arith.addf %28, %30 : vector<16x96xf32>
    %c0_14 = arith.constant 0 : index
    %c0_15 = arith.constant 0 : index
    %32 = vector.load %arg7[%c0_14, %c0_15] : memref<16x96xf32, #tpu.memory_space<vmem>>, vector<16x96xf32>
    tpu.vector_store %arg7[%c0_14, %c0_15], %31 {strides = array<i32>} : memref<16x96xf32, #tpu.memory_space<vmem>>, vector<16x96xf32>,
    return
  }
  func.func @transform_0(%arg0: i32, %arg1: i32) -> (i32, i32) {
    %c0_i32 = arith.constant 0 : i32
    %c0_i32_0 = arith.constant 0 : i32
    return %arg0, %c0_i32 : i32, i32
  }
  func.func @transform_1(%arg0: i32, %arg1: i32) -> (i32, i32) {
    %c0_i32 = arith.constant 0 : i32
    %c0_i32_0 = arith.constant 0 : i32
    %c0_i32_1 = arith.constant 0 : i32
    return %c0_i32, %c0_i32_0 : i32, i32
  }
  func.func @transform_2(%arg0: i32, %arg1: i32) -> (i32, i32) {
    %c0_i32 = arith.constant 0 : i32
    %c0_i32_0 = arith.constant 0 : i32
    %c0_i32_1 = arith.constant 0 : i32
    return %c0_i32, %c0_i32_0 : i32, i32
  }
  func.func @transform_3(%arg0: i32, %arg1: i32) -> (i32, i32) {
    %c0_i32 = arith.constant 0 : i32
    %c0_i32_0 = arith.constant 0 : i32
    return %c0_i32, %arg1 : i32, i32
  }
  func.func @transform_4(%arg0: i32, %arg1: i32) -> (i32, i32) {
    %c0_i32 = arith.constant 0 : i32
    %c0_i32_0 = arith.constant 0 : i32
    return %c0_i32, %arg1 : i32, i32
  }
  func.func @transform_5(%arg0: i32, %arg1: i32) -> (i32, i32) {
    %c0_i32 = arith.constant 0 : i32
    return %arg0, %arg1 : i32, i32
  }
}

module attributes {stable_mosaic.version = 11 : i64} {
  func.func @_attention_kernel(%arg0: i32, %arg1: memref<1x8x96xf32, #tpu.memory_space<vmem>>, %arg2: memref<1x8x32xf32, #tpu.memory_space<vmem>>) attributes {dimension_semantics = [#tpu.dimension_semantics<parallel>], iteration_bounds = array<i64: 2>, scalar_prefetch = 0 : i64, scratch_operands = 0 : i64, tpu.core_type = #tpu.core_type<tc>, window_params = [{transform_indices = @transform_0, window_bounds = array<i64: 1, 8, 96>}, {transform_indices = @transform_1, window_bounds = array<i64: 1, 8, 32>}]} {
    %c0 = arith.constant 0 : index
    %c0_0 = arith.constant 0 : index
    %c0_1 = arith.constant 0 : index
    %0 = vector.load %arg1[%c0, %c0_0, %c0_1] : memref<1x8x96xf32, #tpu.memory_space<vmem>>, vector<1x8x96xf32>
    %1 = vector.shape_cast %0 : vector<1x8x96xf32> to vector<8x96xf32>
    %2 = tpu.iota {dimensions = array<i32: 0>} : vector<8x8xi32>
    %3 = tpu.iota {dimensions = array<i32: 1>} : vector<8x8xi32>
    %4 = arith.cmpi sle, %3, %2 : vector<8x8xi32>
    %5 = vector.extract_strided_slice %1 {offsets = [0, 0], sizes = [8, 8], strides = [1, 1]} : vector<8x96xf32> to vector<8x8xf32>
    %6 = vector.extract_strided_slice %1 {offsets = [0, 32], sizes = [8, 8], strides = [1, 1]} : vector<8x96xf32> to vector<8x8xf32>
    %7 = vector.extract_strided_slice %1 {offsets = [0, 64], sizes = [8, 8], strides = [1, 1]} : vector<8x96xf32> to vector<8x8xf32>
    %8 = arith.truncf %5 : vector<8x8xf32> to vector<8x8xbf16>
    %9 = arith.truncf %6 : vector<8x8xf32> to vector<8x8xbf16>
    %cst = arith.constant dense<0.000000e+00> : vector<8x8xf32>
    %10 = tpu.matmul %8, %9, %cst {dimension_numbers = #tpu.dot_dimension_numbers<[1], [1], [0], [0], [0, 0, 1, 0], [], []>} : vector<8x8xbf16>, vector<8x8xbf16>, vector<8x8xf32> -> vector<8x8xf32>
    %cst_2 = arith.constant 0.353553385 : f32
    %11 = vector.broadcast %cst_2 : f32 to vector<8x8xf32>
    %12 = arith.mulf %10, %11 : vector<8x8xf32>
    %cst_3 = arith.constant -1.000000e+30 : f32
    %13 = vector.broadcast %cst_3 : f32 to vector<8x8xf32>
    %14 = arith.select %4, %12, %13 : vector<8x8xi1>, vector<8x8xf32>
    %cst_4 = arith.constant dense<0xFF800000> : vector<8xf32>
    %15 = vector.multi_reduction <maximumf>, %14, %cst_4 [1] : vector<8x8xf32> to vector<8xf32>
    %16 = vector.shape_cast %15 : vector<8xf32> to vector<8x1xf32>
    %17 = vector.broadcast %16 : vector<8x1xf32> to vector<8x8xf32>
    %18 = arith.subf %14, %17 : vector<8x8xf32>
    %19 = math.exp %18 : vector<8x8xf32>
    %cst_5 = arith.constant dense<0.000000e+00> : vector<8xf32>
    %20 = vector.multi_reduction <add>, %19, %cst_5 [1] : vector<8x8xf32> to vector<8xf32>
    %21 = vector.shape_cast %20 : vector<8xf32> to vector<8x1xf32>
    %22 = tpu.reciprocal %21 {approx = true} : vector<8x1xf32> -> vector<8x1xf32>
    %23 = vector.broadcast %22 : vector<8x1xf32> to vector<8x8xf32>
    %24 = arith.mulf %19, %23 : vector<8x8xf32>
    %25 = arith.truncf %24 : vector<8x8xf32> to vector<8x8xbf16>
    %26 = arith.truncf %7 : vector<8x8xf32> to vector<8x8xbf16>
    %cst_6 = arith.constant dense<0.000000e+00> : vector<8x8xf32>
    %27 = tpu.matmul %25, %26, %cst_6 {dimension_numbers = #tpu.dot_dimension_numbers<[1], [0], [0], [1], [0, 0, 1, 1], [], []>} : vector<8x8xbf16>, vector<8x8xbf16>, vector<8x8xf32> -> vector<8x8xf32>
    %28 = vector.extract_strided_slice %1 {offsets = [0, 8], sizes = [8, 8], strides = [1, 1]} : vector<8x96xf32> to vector<8x8xf32>
    %29 = vector.extract_strided_slice %1 {offsets = [0, 40], sizes = [8, 8], strides = [1, 1]} : vector<8x96xf32> to vector<8x8xf32>
    %30 = vector.extract_strided_slice %1 {offsets = [0, 72], sizes = [8, 8], strides = [1, 1]} : vector<8x96xf32> to vector<8x8xf32>
    %31 = arith.truncf %28 : vector<8x8xf32> to vector<8x8xbf16>
    %32 = arith.truncf %29 : vector<8x8xf32> to vector<8x8xbf16>
    %cst_7 = arith.constant dense<0.000000e+00> : vector<8x8xf32>
    %33 = tpu.matmul %31, %32, %cst_7 {dimension_numbers = #tpu.dot_dimension_numbers<[1], [1], [0], [0], [0, 0, 1, 0], [], []>} : vector<8x8xbf16>, vector<8x8xbf16>, vector<8x8xf32> -> vector<8x8xf32>
    %cst_8 = arith.constant 0.353553385 : f32
    %34 = vector.broadcast %cst_8 : f32 to vector<8x8xf32>
    %35 = arith.mulf %33, %34 : vector<8x8xf32>
    %cst_9 = arith.constant -1.000000e+30 : f32
    %36 = vector.broadcast %cst_9 : f32 to vector<8x8xf32>
    %37 = arith.select %4, %35, %36 : vector<8x8xi1>, vector<8x8xf32>
    %cst_10 = arith.constant dense<0xFF800000> : vector<8xf32>
    %38 = vector.multi_reduction <maximumf>, %37, %cst_10 [1] : vector<8x8xf32> to vector<8xf32>
    %39 = vector.shape_cast %38 : vector<8xf32> to vector<8x1xf32>
    %40 = vector.broadcast %39 : vector<8x1xf32> to vector<8x8xf32>
    %41 = arith.subf %37, %40 : vector<8x8xf32>
    %42 = math.exp %41 : vector<8x8xf32>
    %cst_11 = arith.constant dense<0.000000e+00> : vector<8xf32>
    %43 = vector.multi_reduction <add>, %42, %cst_11 [1] : vector<8x8xf32> to vector<8xf32>
    %44 = vector.shape_cast %43 : vector<8xf32> to vector<8x1xf32>
    %45 = tpu.reciprocal %44 {approx = true} : vector<8x1xf32> -> vector<8x1xf32>
    %46 = vector.broadcast %45 : vector<8x1xf32> to vector<8x8xf32>
    %47 = arith.mulf %42, %46 : vector<8x8xf32>
    %48 = arith.truncf %47 : vector<8x8xf32> to vector<8x8xbf16>
    %49 = arith.truncf %30 : vector<8x8xf32> to vector<8x8xbf16>
    %cst_12 = arith.constant dense<0.000000e+00> : vector<8x8xf32>
    %50 = tpu.matmul %48, %49, %cst_12 {dimension_numbers = #tpu.dot_dimension_numbers<[1], [0], [0], [1], [0, 0, 1, 1], [], []>} : vector<8x8xbf16>, vector<8x8xbf16>, vector<8x8xf32> -> vector<8x8xf32>
    %51 = vector.extract_strided_slice %1 {offsets = [0, 16], sizes = [8, 8], strides = [1, 1]} : vector<8x96xf32> to vector<8x8xf32>
    %52 = vector.extract_strided_slice %1 {offsets = [0, 48], sizes = [8, 8], strides = [1, 1]} : vector<8x96xf32> to vector<8x8xf32>
    %53 = vector.extract_strided_slice %1 {offsets = [0, 80], sizes = [8, 8], strides = [1, 1]} : vector<8x96xf32> to vector<8x8xf32>
    %54 = arith.truncf %51 : vector<8x8xf32> to vector<8x8xbf16>
    %55 = arith.truncf %52 : vector<8x8xf32> to vector<8x8xbf16>
    %cst_13 = arith.constant dense<0.000000e+00> : vector<8x8xf32>
    %56 = tpu.matmul %54, %55, %cst_13 {dimension_numbers = #tpu.dot_dimension_numbers<[1], [1], [0], [0], [0, 0, 1, 0], [], []>} : vector<8x8xbf16>, vector<8x8xbf16>, vector<8x8xf32> -> vector<8x8xf32>
    %cst_14 = arith.constant 0.353553385 : f32
    %57 = vector.broadcast %cst_14 : f32 to vector<8x8xf32>
    %58 = arith.mulf %56, %57 : vector<8x8xf32>
    %cst_15 = arith.constant -1.000000e+30 : f32
    %59 = vector.broadcast %cst_15 : f32 to vector<8x8xf32>
    %60 = arith.select %4, %58, %59 : vector<8x8xi1>, vector<8x8xf32>
    %cst_16 = arith.constant dense<0xFF800000> : vector<8xf32>
    %61 = vector.multi_reduction <maximumf>, %60, %cst_16 [1] : vector<8x8xf32> to vector<8xf32>
    %62 = vector.shape_cast %61 : vector<8xf32> to vector<8x1xf32>
    %63 = vector.broadcast %62 : vector<8x1xf32> to vector<8x8xf32>
    %64 = arith.subf %60, %63 : vector<8x8xf32>
    %65 = math.exp %64 : vector<8x8xf32>
    %cst_17 = arith.constant dense<0.000000e+00> : vector<8xf32>
    %66 = vector.multi_reduction <add>, %65, %cst_17 [1] : vector<8x8xf32> to vector<8xf32>
    %67 = vector.shape_cast %66 : vector<8xf32> to vector<8x1xf32>
    %68 = tpu.reciprocal %67 {approx = true} : vector<8x1xf32> -> vector<8x1xf32>
    %69 = vector.broadcast %68 : vector<8x1xf32> to vector<8x8xf32>
    %70 = arith.mulf %65, %69 : vector<8x8xf32>
    %71 = arith.truncf %70 : vector<8x8xf32> to vector<8x8xbf16>
    %72 = arith.truncf %53 : vector<8x8xf32> to vector<8x8xbf16>
    %cst_18 = arith.constant dense<0.000000e+00> : vector<8x8xf32>
    %73 = tpu.matmul %71, %72, %cst_18 {dimension_numbers = #tpu.dot_dimension_numbers<[1], [0], [0], [1], [0, 0, 1, 1], [], []>} : vector<8x8xbf16>, vector<8x8xbf16>, vector<8x8xf32> -> vector<8x8xf32>
    %74 = vector.extract_strided_slice %1 {offsets = [0, 24], sizes = [8, 8], strides = [1, 1]} : vector<8x96xf32> to vector<8x8xf32>
    %75 = vector.extract_strided_slice %1 {offsets = [0, 56], sizes = [8, 8], strides = [1, 1]} : vector<8x96xf32> to vector<8x8xf32>
    %76 = vector.extract_strided_slice %1 {offsets = [0, 88], sizes = [8, 8], strides = [1, 1]} : vector<8x96xf32> to vector<8x8xf32>
    %77 = arith.truncf %74 : vector<8x8xf32> to vector<8x8xbf16>
    %78 = arith.truncf %75 : vector<8x8xf32> to vector<8x8xbf16>
    %cst_19 = arith.constant dense<0.000000e+00> : vector<8x8xf32>
    %79 = tpu.matmul %77, %78, %cst_19 {dimension_numbers = #tpu.dot_dimension_numbers<[1], [1], [0], [0], [0, 0, 1, 0], [], []>} : vector<8x8xbf16>, vector<8x8xbf16>, vector<8x8xf32> -> vector<8x8xf32>
    %cst_20 = arith.constant 0.353553385 : f32
    %80 = vector.broadcast %cst_20 : f32 to vector<8x8xf32>
    %81 = arith.mulf %79, %80 : vector<8x8xf32>
    %cst_21 = arith.constant -1.000000e+30 : f32
    %82 = vector.broadcast %cst_21 : f32 to vector<8x8xf32>
    %83 = arith.select %4, %81, %82 : vector<8x8xi1>, vector<8x8xf32>
    %cst_22 = arith.constant dense<0xFF800000> : vector<8xf32>
    %84 = vector.multi_reduction <maximumf>, %83, %cst_22 [1] : vector<8x8xf32> to vector<8xf32>
    %85 = vector.shape_cast %84 : vector<8xf32> to vector<8x1xf32>
    %86 = vector.broadcast %85 : vector<8x1xf32> to vector<8x8xf32>
    %87 = arith.subf %83, %86 : vector<8x8xf32>
    %88 = math.exp %87 : vector<8x8xf32>
    %cst_23 = arith.constant dense<0.000000e+00> : vector<8xf32>
    %89 = vector.multi_reduction <add>, %88, %cst_23 [1] : vector<8x8xf32> to vector<8xf32>
    %90 = vector.shape_cast %89 : vector<8xf32> to vector<8x1xf32>
    %91 = tpu.reciprocal %90 {approx = true} : vector<8x1xf32> -> vector<8x1xf32>
    %92 = vector.broadcast %91 : vector<8x1xf32> to vector<8x8xf32>
    %93 = arith.mulf %88, %92 : vector<8x8xf32>
    %94 = arith.truncf %93 : vector<8x8xf32> to vector<8x8xbf16>
    %95 = arith.truncf %76 : vector<8x8xf32> to vector<8x8xbf16>
    %cst_24 = arith.constant dense<0.000000e+00> : vector<8x8xf32>
    %96 = tpu.matmul %94, %95, %cst_24 {dimension_numbers = #tpu.dot_dimension_numbers<[1], [0], [0], [1], [0, 0, 1, 1], [], []>} : vector<8x8xbf16>, vector<8x8xbf16>, vector<8x8xf32> -> vector<8x8xf32>
    %97 = tpu.concatenate %27, %50, %73, %96 in 1 : vector<8x8xf32>, vector<8x8xf32>, vector<8x8xf32>, vector<8x8xf32> -> vector<8x32xf32>
    %c0_25 = arith.constant 0 : index
    %c0_26 = arith.constant 0 : index
    %c0_27 = arith.constant 0 : index
    %98 = vector.load %arg2[%c0_25, %c0_26, %c0_27] : memref<1x8x32xf32, #tpu.memory_space<vmem>>, vector<1x8x32xf32>
    %99 = vector.shape_cast %98 : vector<1x8x32xf32> to vector<8x32xf32>
    %100 = vector.shape_cast %97 : vector<8x32xf32> to vector<1x8x32xf32>
    tpu.vector_store %arg2[%c0_25, %c0_26, %c0_27], %100 {strides = array<i32>} : memref<1x8x32xf32, #tpu.memory_space<vmem>>, vector<1x8x32xf32>,
    return
  }
  func.func @transform_0(%arg0: i32) -> (i32, i32, i32) {
    %c0_i32 = arith.constant 0 : i32
    %c0_i32_0 = arith.constant 0 : i32
    %c0_i32_1 = arith.constant 0 : i32
    return %arg0, %c0_i32, %c0_i32_0 : i32, i32, i32
  }
  func.func @transform_1(%arg0: i32) -> (i32, i32, i32) {
    %c0_i32 = arith.constant 0 : i32
    %c0_i32_0 = arith.constant 0 : i32
    %c0_i32_1 = arith.constant 0 : i32
    return %arg0, %c0_i32, %c0_i32_0 : i32, i32, i32
  }
}

module attributes {stable_mosaic.version = 11 : i64} {
  func.func @_matmul_kernel(%arg0: i32, %arg1: i32, %arg2: i32, %arg3: memref<16x32xf32, #tpu.memory_space<vmem>>, %arg4: memref<32x32xf32, #tpu.memory_space<vmem>>, %arg5: memref<1x32xf32, #tpu.memory_space<vmem>>, %arg6: memref<16x32xf32, #tpu.memory_space<vmem>>, %arg7: memref<16x32xf32, #tpu.memory_space<vmem>>, %arg8: memref<16x32xf32, #tpu.memory_space<vmem>>) attributes {dimension_semantics = [#tpu.dimension_semantics<parallel>, #tpu.dimension_semantics<parallel>, #tpu.dimension_semantics<arbitrary>], iteration_bounds = array<i64: 1, 1, 1>, scalar_prefetch = 0 : i64, scratch_operands = 1 : i64, tpu.core_type = #tpu.core_type<tc>, window_params = [{transform_indices = @transform_0, window_bounds = array<i64: 16, 32>}, {transform_indices = @transform_1, window_bounds = array<i64: 32, 32>}, {transform_indices = @transform_2, window_bounds = array<i64: 1, 32>}, {transform_indices = @transform_3, window_bounds = array<i64: 16, 32>}, {transform_indices = @transform_4, window_bounds = array<i64: 16, 32>}]} {
    %c0_i32 = arith.constant 0 : i32
    %0 = arith.cmpi eq, %arg2, %c0_i32 : i32
    %1 = arith.extui %0 : i1 to i32
    %c0_i32_0 = arith.constant 0 : i32
    %2 = arith.cmpi ne, %1, %c0_i32_0 : i32
    scf.if %2 {
      %cst_10 = arith.constant 0.000000e+00 : f32
      %14 = vector.broadcast %cst_10 : f32 to vector<16x32xf32>
      %c0_11 = arith.constant 0 : index
      %c0_12 = arith.constant 0 : index
      %15 = vector.load %arg8[%c0_11, %c0_12] : memref<16x32xf32, #tpu.memory_space<vmem>>, vector<16x32xf32>
      tpu.vector_store %arg8[%c0_11, %c0_12], %14 {strides = array<i32>} : memref<16x32xf32, #tpu.memory_space<vmem>>, vector<16x32xf32>,
    } else {
    }
    %c0 = arith.constant 0 : index
    %c0_1 = arith.constant 0 : index
    %3 = vector.load %arg8[%c0, %c0_1] : memref<16x32xf32, #tpu.memory_space<vmem>>, vector<16x32xf32>
    %c0_2 = arith.constant 0 : index
    %c0_3 = arith.constant 0 : index
    %4 = vector.load %arg3[%c0_2, %c0_3] : memref<16x32xf32, #tpu.memory_space<vmem>>, vector<16x32xf32>
    %5 = arith.truncf %4 : vector<16x32xf32> to vector<16x32xbf16>
    %c0_4 = arith.constant 0 : index
    %c0_5 = arith.constant 0 : index
    %6 = vector.load %arg4[%c0_4, %c0_5] : memref<32x32xf32, #tpu.memory_space<vmem>>, vector<32x32xf32>
    %7 = arith.truncf %6 : vector<32x32xf32> to vector<32x32xbf16>
    %cst = arith.constant dense<0.000000e+00> : vector<16x32xf32>
    %8 = tpu.matmul %5, %7, %cst {dimension_numbers = #tpu.dot_dimension_numbers<[1], [0], [0], [1], [0, 0, 1, 1], [], []>} : vector<16x32xbf16>, vector<32x32xbf16>, vector<16x32xf32> -> vector<16x32xf32>
    %9 = arith.addf %3, %8 : vector<16x32xf32>
    %c0_6 = arith.constant 0 : index
    %c0_7 = arith.constant 0 : index
    %10 = vector.load %arg8[%c0_6, %c0_7] : memref<16x32xf32, #tpu.memory_space<vmem>>, vector<16x32xf32>
    tpu.vector_store %arg8[%c0_6, %c0_7], %9 {strides = array<i32>} : memref<16x32xf32, #tpu.memory_space<vmem>>, vector<16x32xf32>,
    %c0_i32_8 = arith.constant 0 : i32
    %11 = arith.cmpi eq, %arg2, %c0_i32_8 : i32
    %12 = arith.extui %11 : i1 to i32
    %c0_i32_9 = arith.constant 0 : i32
    %13 = arith.cmpi ne, %12, %c0_i32_9 : i32
    scf.if %13 {
      %c0_10 = arith.constant 0 : index
      %c0_11 = arith.constant 0 : index
      %14 = vector.load %arg8[%c0_10, %c0_11] : memref<16x32xf32, #tpu.memory_space<vmem>>, vector<16x32xf32>
      %c0_12 = arith.constant 0 : index
      %c0_13 = arith.constant 0 : index
      %15 = vector.load %arg5[%c0_12, %c0_13] : memref<1x32xf32, #tpu.memory_space<vmem>>, vector<1x32xf32>
      %16 = vector.broadcast %15 : vector<1x32xf32> to vector<16x32xf32>
      %17 = arith.addf %14, %16 : vector<16x32xf32>
      %c0_14 = arith.constant 0 : index
      %c0_15 = arith.constant 0 : index
      %18 = vector.load %arg6[%c0_14, %c0_15] : memref<16x32xf32, #tpu.memory_space<vmem>>, vector<16x32xf32>
      %19 = arith.addf %17, %18 : vector<16x32xf32>
      %c0_16 = arith.constant 0 : index
      %c0_17 = arith.constant 0 : index
      %20 = vector.load %arg7[%c0_16, %c0_17] : memref<16x32xf32, #tpu.memory_space<vmem>>, vector<16x32xf32>
      tpu.vector_store %arg7[%c0_16, %c0_17], %19 {strides = array<i32>} : memref<16x32xf32, #tpu.memory_space<vmem>>, vector<16x32xf32>,
    } else {
    }
    return
  }
  func.func @transform_0(%arg0: i32, %arg1: i32, %arg2: i32) -> (i32, i32) {
    %c0_i32 = arith.constant 0 : i32
    return %arg0, %arg2 : i32, i32
  }
  func.func @transform_1(%arg0: i32, %arg1: i32, %arg2: i32) -> (i32, i32) {
    %c0_i32 = arith.constant 0 : i32
    return %arg2, %arg1 : i32, i32
  }
  func.func @transform_2(%arg0: i32, %arg1: i32, %arg2: i32) -> (i32, i32) {
    %c0_i32 = arith.constant 0 : i32
    %c0_i32_0 = arith.constant 0 : i32
    return %c0_i32, %arg1 : i32, i32
  }
  func.func @transform_3(%arg0: i32, %arg1: i32, %arg2: i32) -> (i32, i32) {
    %c0_i32 = arith.constant 0 : i32
    return %arg0, %arg1 : i32, i32
  }
  func.func @transform_4(%arg0: i32, %arg1: i32, %arg2: i32) -> (i32, i32) {
    %c0_i32 = arith.constant 0 : i32
    return %arg0, %arg1 : i32, i32
  }
}

module attributes {stable_mosaic.version = 11 : i64} {
  func.func @_ln_linear_kernel(%arg0: i32, %arg1: i32, %arg2: memref<16x32xf32, #tpu.memory_space<vmem>>, %arg3: memref<1x32xf32, #tpu.memory_space<vmem>>, %arg4: memref<1x32xf32, #tpu.memory_space<vmem>>, %arg5: memref<32x128xf32, #tpu.memory_space<vmem>>, %arg6: memref<1x128xf32, #tpu.memory_space<vmem>>, %arg7: memref<16x128xf32, #tpu.memory_space<vmem>>) attributes {dimension_semantics = [#tpu.dimension_semantics<parallel>, #tpu.dimension_semantics<parallel>], iteration_bounds = array<i64: 1, 1>, scalar_prefetch = 0 : i64, scratch_operands = 0 : i64, tpu.core_type = #tpu.core_type<tc>, window_params = [{transform_indices = @transform_0, window_bounds = array<i64: 16, 32>}, {pipeline_mode = #tpu.pipeline_mode<synchronous>, transform_indices = @transform_1, window_bounds = array<i64: 1, 32>}, {pipeline_mode = #tpu.pipeline_mode<synchronous>, transform_indices = @transform_2, window_bounds = array<i64: 1, 32>}, {transform_indices = @transform_3, window_bounds = array<i64: 32, 128>}, {transform_indices = @transform_4, window_bounds = array<i64: 1, 128>}, {transform_indices = @transform_5, window_bounds = array<i64: 16, 128>}]} {
    %c0 = arith.constant 0 : index
    %c0_0 = arith.constant 0 : index
    %0 = vector.load %arg2[%c0, %c0_0] : memref<16x32xf32, #tpu.memory_space<vmem>>, vector<16x32xf32>
    %cst = arith.constant dense<0.000000e+00> : vector<16xf32>
    %1 = vector.multi_reduction <add>, %0, %cst [1] : vector<16x32xf32> to vector<16xf32>
    %2 = vector.shape_cast %1 : vector<16xf32> to vector<16x1xf32>
    %cst_1 = arith.constant 3.200000e+01 : f32
    %3 = vector.broadcast %cst_1 : f32 to vector<16x1xf32>
    %4 = arith.divf %2, %3 : vector<16x1xf32>
    %5 = vector.broadcast %4 : vector<16x1xf32> to vector<16x32xf32>
    %6 = arith.subf %0, %5 : vector<16x32xf32>
    %7 = arith.mulf %6, %6 : vector<16x32xf32>
    %cst_2 = arith.constant dense<0.000000e+00> : vector<16xf32>
    %8 = vector.multi_reduction <add>, %7, %cst_2 [1] : vector<16x32xf32> to vector<16xf32>
    %9 = vector.shape_cast %8 : vector<16xf32> to vector<16x1xf32>
    %cst_3 = arith.constant 3.200000e+01 : f32
    %10 = vector.broadcast %cst_3 : f32 to vector<16x1xf32>
    %11 = arith.divf %9, %10 : vector<16x1xf32>
    %12 = vector.broadcast %4 : vector<16x1xf32> to vector<16x32xf32>
    %13 = arith.subf %0, %12 : vector<16x32xf32>
    %cst_4 = arith.constant 9.99999974E-6 : f32
    %14 = vector.broadcast %cst_4 : f32 to vector<16x1xf32>
    %15 = arith.addf %11, %14 : vector<16x1xf32>
    %16 = math.rsqrt %15 : vector<16x1xf32>
    %17 = vector.broadcast %16 : vector<16x1xf32> to vector<16x32xf32>
    %18 = arith.mulf %13, %17 : vector<16x32xf32>
    %c0_5 = arith.constant 0 : index
    %c0_6 = arith.constant 0 : index
    %19 = vector.load %arg3[%c0_5, %c0_6] : memref<1x32xf32, #tpu.memory_space<vmem>>, vector<1x32xf32>
    %20 = vector.broadcast %19 : vector<1x32xf32> to vector<16x32xf32>
    %21 = arith.mulf %18, %20 : vector<16x32xf32>
    %c0_7 = arith.constant 0 : index
    %c0_8 = arith.constant 0 : index
    %22 = vector.load %arg4[%c0_7, %c0_8] : memref<1x32xf32, #tpu.memory_space<vmem>>, vector<1x32xf32>
    %23 = vector.broadcast %22 : vector<1x32xf32> to vector<16x32xf32>
    %24 = arith.addf %21, %23 : vector<16x32xf32>
    %25 = arith.truncf %24 : vector<16x32xf32> to vector<16x32xbf16>
    %c0_9 = arith.constant 0 : index
    %c0_10 = arith.constant 0 : index
    %26 = vector.load %arg5[%c0_9, %c0_10] : memref<32x128xf32, #tpu.memory_space<vmem>>, vector<32x128xf32>
    %27 = arith.truncf %26 : vector<32x128xf32> to vector<32x128xbf16>
    %cst_11 = arith.constant dense<0.000000e+00> : vector<16x128xf32>
    %28 = tpu.matmul %25, %27, %cst_11 {dimension_numbers = #tpu.dot_dimension_numbers<[1], [0], [0], [1], [0, 0, 1, 1], [], []>} : vector<16x32xbf16>, vector<32x128xbf16>, vector<16x128xf32> -> vector<16x128xf32>
    %c0_12 = arith.constant 0 : index
    %c0_13 = arith.constant 0 : index
    %29 = vector.load %arg6[%c0_12, %c0_13] : memref<1x128xf32, #tpu.memory_space<vmem>>, vector<1x128xf32>
    %30 = vector.broadcast %29 : vector<1x128xf32> to vector<16x128xf32>
    %31 = arith.addf %28, %30 : vector<16x128xf32>
    %cst_14 = arith.constant 5.000000e-01 : f32
    %32 = vector.broadcast %cst_14 : f32 to vector<16x128xf32>
    %33 = arith.mulf %32, %31 : vector<16x128xf32>
    %cst_15 = arith.constant 4.471500e-02 : f32
    %34 = vector.broadcast %cst_15 : f32 to vector<16x128xf32>
    %35 = arith.mulf %34, %31 : vector<16x128xf32>
    %36 = arith.mulf %35, %31 : vector<16x128xf32>
    %37 = arith.mulf %36, %31 : vector<16x128xf32>
    %38 = arith.addf %31, %37 : vector<16x128xf32>
    %cst_16 = arith.constant 0.797884583 : f32
    %39 = vector.broadcast %cst_16 : f32 to vector<16x128xf32>
    %40 = arith.mulf %39, %38 : vector<16x128xf32>
    %41 = math.tanh %40 : vector<16x128xf32>
    %cst_17 = arith.constant 1.000000e+00 : f32
    %42 = vector.broadcast %cst_17 : f32 to vector<16x128xf32>
    %43 = arith.addf %42, %41 : vector<16x128xf32>
    %44 = arith.mulf %33, %43 : vector<16x128xf32>
    %c0_18 = arith.constant 0 : index
    %c0_19 = arith.constant 0 : index
    %45 = vector.load %arg7[%c0_18, %c0_19] : memref<16x128xf32, #tpu.memory_space<vmem>>, vector<16x128xf32>
    tpu.vector_store %arg7[%c0_18, %c0_19], %44 {strides = array<i32>} : memref<16x128xf32, #tpu.memory_space<vmem>>, vector<16x128xf32>,
    return
  }
  func.func @transform_0(%arg0: i32, %arg1: i32) -> (i32, i32) {
    %c0_i32 = arith.constant 0 : i32
    %c0_i32_0 = arith.constant 0 : i32
    return %arg0, %c0_i32 : i32, i32
  }
  func.func @transform_1(%arg0: i32, %arg1: i32) -> (i32, i32) {
    %c0_i32 = arith.constant 0 : i32
    %c0_i32_0 = arith.constant 0 : i32
    %c0_i32_1 = arith.constant 0 : i32
    return %c0_i32, %c0_i32_0 : i32, i32
  }
  func.func @transform_2(%arg0: i32, %arg1: i32) -> (i32, i32) {
    %c0_i32 = arith.constant 0 : i32
    %c0_i32_0 = arith.constant 0 : i32
    %c0_i32_1 = arith.constant 0 : i32
    return %c0_i32, %c0_i32_0 : i32, i32
  }
  func.func @transform_3(%arg0: i32, %arg1: i32) -> (i32, i32) {
    %c0_i32 = arith.constant 0 : i32
    %c0_i32_0 = arith.constant 0 : i32
    return %c0_i32, %arg1 : i32, i32
  }
  func.func @transform_4(%arg0: i32, %arg1: i32) -> (i32, i32) {
    %c0_i32 = arith.constant 0 : i32
    %c0_i32_0 = arith.constant 0 : i32
    return %c0_i32, %arg1 : i32, i32
  }
  func.func @transform_5(%arg0: i32, %arg1: i32) -> (i32, i32) {
    %c0_i32 = arith.constant 0 : i32
    return %arg0, %arg1 : i32, i32
  }
}

module attributes {stable_mosaic.version = 11 : i64} {
  func.func @_layernorm_kernel(%arg0: i32, %arg1: memref<16x32xf32, #tpu.memory_space<vmem>>, %arg2: memref<1x32xf32, #tpu.memory_space<vmem>>, %arg3: memref<1x32xf32, #tpu.memory_space<vmem>>, %arg4: memref<16x32xf32, #tpu.memory_space<vmem>>) attributes {dimension_semantics = [#tpu.dimension_semantics<parallel>], iteration_bounds = array<i64: 1>, scalar_prefetch = 0 : i64, scratch_operands = 0 : i64, tpu.core_type = #tpu.core_type<tc>, window_params = [{transform_indices = @transform_0, window_bounds = array<i64: 16, 32>}, {pipeline_mode = #tpu.pipeline_mode<synchronous>, transform_indices = @transform_1, window_bounds = array<i64: 1, 32>}, {pipeline_mode = #tpu.pipeline_mode<synchronous>, transform_indices = @transform_2, window_bounds = array<i64: 1, 32>}, {transform_indices = @transform_3, window_bounds = array<i64: 16, 32>}]} {
    %c0 = arith.constant 0 : index
    %c0_0 = arith.constant 0 : index
    %0 = vector.load %arg1[%c0, %c0_0] : memref<16x32xf32, #tpu.memory_space<vmem>>, vector<16x32xf32>
    %cst = arith.constant dense<0.000000e+00> : vector<16xf32>
    %1 = vector.multi_reduction <add>, %0, %cst [1] : vector<16x32xf32> to vector<16xf32>
    %2 = vector.shape_cast %1 : vector<16xf32> to vector<16x1xf32>
    %cst_1 = arith.constant 3.200000e+01 : f32
    %3 = vector.broadcast %cst_1 : f32 to vector<16x1xf32>
    %4 = arith.divf %2, %3 : vector<16x1xf32>
    %5 = vector.broadcast %4 : vector<16x1xf32> to vector<16x32xf32>
    %6 = arith.subf %0, %5 : vector<16x32xf32>
    %7 = arith.mulf %6, %6 : vector<16x32xf32>
    %cst_2 = arith.constant dense<0.000000e+00> : vector<16xf32>
    %8 = vector.multi_reduction <add>, %7, %cst_2 [1] : vector<16x32xf32> to vector<16xf32>
    %9 = vector.shape_cast %8 : vector<16xf32> to vector<16x1xf32>
    %cst_3 = arith.constant 3.200000e+01 : f32
    %10 = vector.broadcast %cst_3 : f32 to vector<16x1xf32>
    %11 = arith.divf %9, %10 : vector<16x1xf32>
    %12 = vector.broadcast %4 : vector<16x1xf32> to vector<16x32xf32>
    %13 = arith.subf %0, %12 : vector<16x32xf32>
    %cst_4 = arith.constant 9.99999974E-6 : f32
    %14 = vector.broadcast %cst_4 : f32 to vector<16x1xf32>
    %15 = arith.addf %11, %14 : vector<16x1xf32>
    %16 = math.rsqrt %15 : vector<16x1xf32>
    %17 = vector.broadcast %16 : vector<16x1xf32> to vector<16x32xf32>
    %18 = arith.mulf %13, %17 : vector<16x32xf32>
    %c0_5 = arith.constant 0 : index
    %c0_6 = arith.constant 0 : index
    %19 = vector.load %arg2[%c0_5, %c0_6] : memref<1x32xf32, #tpu.memory_space<vmem>>, vector<1x32xf32>
    %20 = vector.broadcast %19 : vector<1x32xf32> to vector<16x32xf32>
    %21 = arith.mulf %18, %20 : vector<16x32xf32>
    %c0_7 = arith.constant 0 : index
    %c0_8 = arith.constant 0 : index
    %22 = vector.load %arg3[%c0_7, %c0_8] : memref<1x32xf32, #tpu.memory_space<vmem>>, vector<1x32xf32>
    %23 = vector.broadcast %22 : vector<1x32xf32> to vector<16x32xf32>
    %24 = arith.addf %21, %23 : vector<16x32xf32>
    %c0_9 = arith.constant 0 : index
    %c0_10 = arith.constant 0 : index
    %25 = vector.load %arg4[%c0_9, %c0_10] : memref<16x32xf32, #tpu.memory_space<vmem>>, vector<16x32xf32>
    tpu.vector_store %arg4[%c0_9, %c0_10], %24 {strides = array<i32>} : memref<16x32xf32, #tpu.memory_space<vmem>>, vector<16x32xf32>,
    return
  }
  func.func @transform_0(%arg0: i32) -> (i32, i32) {
    %c0_i32 = arith.constant 0 : i32
    %c0_i32_0 = arith.constant 0 : i32
    return %arg0, %c0_i32 : i32, i32
  }
  func.func @transform_1(%arg0: i32) -> (i32, i32) {
    %c0_i32 = arith.constant 0 : i32
    %c0_i32_0 = arith.constant 0 : i32
    %c0_i32_1 = arith.constant 0 : i32
    return %c0_i32, %c0_i32_0 : i32, i32
  }
  func.func @transform_2(%arg0: i32) -> (i32, i32) {
    %c0_i32 = arith.constant 0 : i32
    %c0_i32_0 = arith.constant 0 : i32
    %c0_i32_1 = arith.constant 0 : i32
    return %c0_i32, %c0_i32_0 : i32, i32
  }
  func.func @transform_3(%arg0: i32) -> (i32, i32) {
    %c0_i32 = arith.constant 0 : i32
    %c0_i32_0 = arith.constant 0 : i32
    return %arg0, %c0_i32 : i32, i32
  }
}

module attributes {stable_mosaic.version = 11 : i64} {
  func.func @_matmul_kernel(%arg0: i32, %arg1: i32, %arg2: i32, %arg3: memref<16x128xf32, #tpu.memory_space<vmem>>, %arg4: memref<128x32xf32, #tpu.memory_space<vmem>>, %arg5: memref<1x32xf32, #tpu.memory_space<vmem>>, %arg6: memref<16x32xf32, #tpu.memory_space<vmem>>, %arg7: memref<16x32xf32, #tpu.memory_space<vmem>>, %arg8: memref<16x32xf32, #tpu.memory_space<vmem>>) attributes {dimension_semantics = [#tpu.dimension_semantics<parallel>, #tpu.dimension_semantics<parallel>, #tpu.dimension_semantics<arbitrary>], iteration_bounds = array<i64: 1, 1, 1>, scalar_prefetch = 0 : i64, scratch_operands = 1 : i64, tpu.core_type = #tpu.core_type<tc>, window_params = [{transform_indices = @transform_0, window_bounds = array<i64: 16, 128>}, {transform_indices = @transform_1, window_bounds = array<i64: 128, 32>}, {transform_indices = @transform_2, window_bounds = array<i64: 1, 32>}, {transform_indices = @transform_3, window_bounds = array<i64: 16, 32>}, {transform_indices = @transform_4, window_bounds = array<i64: 16, 32>}]} {
    %c0_i32 = arith.constant 0 : i32
    %0 = arith.cmpi eq, %arg2, %c0_i32 : i32
    %1 = arith.extui %0 : i1 to i32
    %c0_i32_0 = arith.constant 0 : i32
    %2 = arith.cmpi ne, %1, %c0_i32_0 : i32
    scf.if %2 {
      %cst_10 = arith.constant 0.000000e+00 : f32
      %14 = vector.broadcast %cst_10 : f32 to vector<16x32xf32>
      %c0_11 = arith.constant 0 : index
      %c0_12 = arith.constant 0 : index
      %15 = vector.load %arg8[%c0_11, %c0_12] : memref<16x32xf32, #tpu.memory_space<vmem>>, vector<16x32xf32>
      tpu.vector_store %arg8[%c0_11, %c0_12], %14 {strides = array<i32>} : memref<16x32xf32, #tpu.memory_space<vmem>>, vector<16x32xf32>,
    } else {
    }
    %c0 = arith.constant 0 : index
    %c0_1 = arith.constant 0 : index
    %3 = vector.load %arg8[%c0, %c0_1] : memref<16x32xf32, #tpu.memory_space<vmem>>, vector<16x32xf32>
    %c0_2 = arith.constant 0 : index
    %c0_3 = arith.constant 0 : index
    %4 = vector.load %arg3[%c0_2, %c0_3] : memref<16x128xf32, #tpu.memory_space<vmem>>, vector<16x128xf32>
    %5 = arith.truncf %4 : vector<16x128xf32> to vector<16x128xbf16>
    %c0_4 = arith.constant 0 : index
    %c0_5 = arith.constant 0 : index
    %6 = vector.load %arg4[%c0_4, %c0_5] : memref<128x32xf32, #tpu.memory_space<vmem>>, vector<128x32xf32>
    %7 = arith.truncf %6 : vector<128x32xf32> to vector<128x32xbf16>
    %cst = arith.constant dense<0.000000e+00> : vector<16x32xf32>
    %8 = tpu.matmul %5, %7, %cst {dimension_numbers = #tpu.dot_dimension_numbers<[1], [0], [0], [1], [0, 0, 1, 1], [], []>} : vector<16x128xbf16>, vector<128x32xbf16>, vector<16x32xf32> -> vector<16x32xf32>
    %9 = arith.addf %3, %8 : vector<16x32xf32>
    %c0_6 = arith.constant 0 : index
    %c0_7 = arith.constant 0 : index
    %10 = vector.load %arg8[%c0_6, %c0_7] : memref<16x32xf32, #tpu.memory_space<vmem>>, vector<16x32xf32>
    tpu.vector_store %arg8[%c0_6, %c0_7], %9 {strides = array<i32>} : memref<16x32xf32, #tpu.memory_space<vmem>>, vector<16x32xf32>,
    %c0_i32_8 = arith.constant 0 : i32
    %11 = arith.cmpi eq, %arg2, %c0_i32_8 : i32
    %12 = arith.extui %11 : i1 to i32
    %c0_i32_9 = arith.constant 0 : i32
    %13 = arith.cmpi ne, %12, %c0_i32_9 : i32
    scf.if %13 {
      %c0_10 = arith.constant 0 : index
      %c0_11 = arith.constant 0 : index
      %14 = vector.load %arg8[%c0_10, %c0_11] : memref<16x32xf32, #tpu.memory_space<vmem>>, vector<16x32xf32>
      %c0_12 = arith.constant 0 : index
      %c0_13 = arith.constant 0 : index
      %15 = vector.load %arg5[%c0_12, %c0_13] : memref<1x32xf32, #tpu.memory_space<vmem>>, vector<1x32xf32>
      %16 = vector.broadcast %15 : vector<1x32xf32> to vector<16x32xf32>
      %17 = arith.addf %14, %16 : vector<16x32xf32>
      %c0_14 = arith.constant 0 : index
      %c0_15 = arith.constant 0 : index
      %18 = vector.load %arg6[%c0_14, %c0_15] : memref<16x32xf32, #tpu.memory_space<vmem>>, vector<16x32xf32>
      %19 = arith.addf %17, %18 : vector<16x32xf32>
      %c0_16 = arith.constant 0 : index
      %c0_17 = arith.constant 0 : index
      %20 = vector.load %arg7[%c0_16, %c0_17] : memref<16x32xf32, #tpu.memory_space<vmem>>, vector<16x32xf32>
      tpu.vector_store %arg7[%c0_16, %c0_17], %19 {strides = array<i32>} : memref<16x32xf32, #tpu.memory_space<vmem>>, vector<16x32xf32>,
    } else {
    }
    return
  }
  func.func @transform_0(%arg0: i32, %arg1: i32, %arg2: i32) -> (i32, i32) {
    %c0_i32 = arith.constant 0 : i32
    return %arg0, %arg2 : i32, i32
  }
  func.func @transform_1(%arg0: i32, %arg1: i32, %arg2: i32) -> (i32, i32) {
    %c0_i32 = arith.constant 0 : i32
    return %arg2, %arg1 : i32, i32
  }
  func.func @transform_2(%arg0: i32, %arg1: i32, %arg2: i32) -> (i32, i32) {
    %c0_i32 = arith.constant 0 : i32
    %c0_i32_0 = arith.constant 0 : i32
    return %c0_i32, %arg1 : i32, i32
  }
  func.func @transform_3(%arg0: i32, %arg1: i32, %arg2: i32) -> (i32, i32) {
    %c0_i32 = arith.constant 0 : i32
    return %arg0, %arg1 : i32, i32
  }
  func.func @transform_4(%arg0: i32, %arg1: i32, %arg2: i32) -> (i32, i32) {
    %c0_i32 = arith.constant 0 : i32
    return %arg0, %arg1 : i32, i32
  }
}

module attributes {stable_mosaic.version = 11 : i64} {
  func.func @_matmul_kernel(%arg0: i32, %arg1: i32, %arg2: i32, %arg3: memref<16x32xf32, #tpu.memory_space<vmem>>, %arg4: memref<32x96xf32, #tpu.memory_space<vmem>>, %arg5: memref<1x96xf32, #tpu.memory_space<vmem>>, %arg6: memref<16x96xf32, #tpu.memory_space<vmem>>, %arg7: memref<16x96xf32, #tpu.memory_space<vmem>>) attributes {dimension_semantics = [#tpu.dimension_semantics<parallel>, #tpu.dimension_semantics<parallel>, #tpu.dimension_semantics<arbitrary>], iteration_bounds = array<i64: 1, 1, 1>, scalar_prefetch = 0 : i64, scratch_operands = 1 : i64, tpu.core_type = #tpu.core_type<tc>, window_params = [{transform_indices = @transform_0, window_bounds = array<i64: 16, 32>}, {transform_indices = @transform_1, window_bounds = array<i64: 32, 96>}, {transform_indices = @transform_2, window_bounds = array<i64: 1, 96>}, {transform_indices = @transform_3, window_bounds = array<i64: 16, 96>}]} {
    %c0_i32 = arith.constant 0 : i32
    %0 = arith.cmpi eq, %arg2, %c0_i32 : i32
    %1 = arith.extui %0 : i1 to i32
    %c0_i32_0 = arith.constant 0 : i32
    %2 = arith.cmpi ne, %1, %c0_i32_0 : i32
    scf.if %2 {
      %cst_10 = arith.constant 0.000000e+00 : f32
      %14 = vector.broadcast %cst_10 : f32 to vector<16x96xf32>
      %c0_11 = arith.constant 0 : index
      %c0_12 = arith.constant 0 : index
      %15 = vector.load %arg7[%c0_11, %c0_12] : memref<16x96xf32, #tpu.memory_space<vmem>>, vector<16x96xf32>
      tpu.vector_store %arg7[%c0_11, %c0_12], %14 {strides = array<i32>} : memref<16x96xf32, #tpu.memory_space<vmem>>, vector<16x96xf32>,
    } else {
    }
    %c0 = arith.constant 0 : index
    %c0_1 = arith.constant 0 : index
    %3 = vector.load %arg7[%c0, %c0_1] : memref<16x96xf32, #tpu.memory_space<vmem>>, vector<16x96xf32>
    %c0_2 = arith.constant 0 : index
    %c0_3 = arith.constant 0 : index
    %4 = vector.load %arg3[%c0_2, %c0_3] : memref<16x32xf32, #tpu.memory_space<vmem>>, vector<16x32xf32>
    %5 = arith.truncf %4 : vector<16x32xf32> to vector<16x32xbf16>
    %c0_4 = arith.constant 0 : index
    %c0_5 = arith.constant 0 : index
    %6 = vector.load %arg4[%c0_4, %c0_5] : memref<32x96xf32, #tpu.memory_space<vmem>>, vector<32x96xf32>
    %7 = arith.truncf %6 : vector<32x96xf32> to vector<32x96xbf16>
    %cst = arith.constant dense<0.000000e+00> : vector<16x96xf32>
    %8 = tpu.matmul %5, %7, %cst {dimension_numbers = #tpu.dot_dimension_numbers<[1], [0], [0], [1], [0, 0, 1, 1], [], []>} : vector<16x32xbf16>, vector<32x96xbf16>, vector<16x96xf32> -> vector<16x96xf32>
    %9 = arith.addf %3, %8 : vector<16x96xf32>
    %c0_6 = arith.constant 0 : index
    %c0_7 = arith.constant 0 : index
    %10 = vector.load %arg7[%c0_6, %c0_7] : memref<16x96xf32, #tpu.memory_space<vmem>>, vector<16x96xf32>
    tpu.vector_store %arg7[%c0_6, %c0_7], %9 {strides = array<i32>} : memref<16x96xf32, #tpu.memory_space<vmem>>, vector<16x96xf32>,
    %c0_i32_8 = arith.constant 0 : i32
    %11 = arith.cmpi eq, %arg2, %c0_i32_8 : i32
    %12 = arith.extui %11 : i1 to i32
    %c0_i32_9 = arith.constant 0 : i32
    %13 = arith.cmpi ne, %12, %c0_i32_9 : i32
    scf.if %13 {
      %c0_10 = arith.constant 0 : index
      %c0_11 = arith.constant 0 : index
      %14 = vector.load %arg7[%c0_10, %c0_11] : memref<16x96xf32, #tpu.memory_space<vmem>>, vector<16x96xf32>
      %c0_12 = arith.constant 0 : index
      %c0_13 = arith.constant 0 : index
      %15 = vector.load %arg5[%c0_12, %c0_13] : memref<1x96xf32, #tpu.memory_space<vmem>>, vector<1x96xf32>
      %16 = vector.broadcast %15 : vector<1x96xf32> to vector<16x96xf32>
      %17 = arith.addf %14, %16 : vector<16x96xf32>
      %c0_14 = arith.constant 0 : index
      %c0_15 = arith.constant 0 : index
      %18 = vector.load %arg6[%c0_14, %c0_15] : memref<16x96xf32, #tpu.memory_space<vmem>>, vector<16x96xf32>
      tpu.vector_store %arg6[%c0_14, %c0_15], %17 {strides = array<i32>} : memref<16x96xf32, #tpu.memory_space<vmem>>, vector<16x96xf32>,
    } else {
    }
    return
  }
  func.func @transform_0(%arg0: i32, %arg1: i32, %arg2: i32) -> (i32, i32) {
    %c0_i32 = arith.constant 0 : i32
    return %arg0, %arg2 : i32, i32
  }
  func.func @transform_1(%arg0: i32, %arg1: i32, %arg2: i32) -> (i32, i32) {
    %c0_i32 = arith.constant 0 : i32
    return %arg2, %arg1 : i32, i32
  }
  func.func @transform_2(%arg0: i32, %arg1: i32, %arg2: i32) -> (i32, i32) {
    %c0_i32 = arith.constant 0 : i32
    %c0_i32_0 = arith.constant 0 : i32
    return %c0_i32, %arg1 : i32, i32
  }
  func.func @transform_3(%arg0: i32, %arg1: i32, %arg2: i32) -> (i32, i32) {
    %c0_i32 = arith.constant 0 : i32
    return %arg0, %arg1 : i32, i32
  }
}

module attributes {stable_mosaic.version = 11 : i64} {
  func.func @_attention_kernel(%arg0: i32, %arg1: memref<1x2x96xf32, #tpu.memory_space<vmem>>, %arg2: memref<1x2x32xf32, #tpu.memory_space<vmem>>) attributes {dimension_semantics = [#tpu.dimension_semantics<parallel>], iteration_bounds = array<i64: 8>, scalar_prefetch = 0 : i64, scratch_operands = 0 : i64, tpu.core_type = #tpu.core_type<tc>, window_params = [{transform_indices = @transform_0, window_bounds = array<i64: 1, 2, 96>}, {transform_indices = @transform_1, window_bounds = array<i64: 1, 2, 32>}]} {
    %c0 = arith.constant 0 : index
    %c0_0 = arith.constant 0 : index
    %c0_1 = arith.constant 0 : index
    %0 = vector.load %arg1[%c0, %c0_0, %c0_1] : memref<1x2x96xf32, #tpu.memory_space<vmem>>, vector<1x2x96xf32>
    %1 = vector.shape_cast %0 : vector<1x2x96xf32> to vector<2x96xf32>
    %2 = vector.extract_strided_slice %1 {offsets = [0, 0], sizes = [2, 8], strides = [1, 1]} : vector<2x96xf32> to vector<2x8xf32>
    %3 = vector.extract_strided_slice %1 {offsets = [0, 32], sizes = [2, 8], strides = [1, 1]} : vector<2x96xf32> to vector<2x8xf32>
    %4 = vector.extract_strided_slice %1 {offsets = [0, 64], sizes = [2, 8], strides = [1, 1]} : vector<2x96xf32> to vector<2x8xf32>
    %5 = arith.truncf %2 : vector<2x8xf32> to vector<2x8xbf16>
    %6 = arith.truncf %3 : vector<2x8xf32> to vector<2x8xbf16>
    %cst = arith.constant dense<0.000000e+00> : vector<2x2xf32>
    %7 = tpu.matmul %5, %6, %cst {dimension_numbers = #tpu.dot_dimension_numbers<[1], [1], [0], [0], [0, 0, 1, 0], [], []>} : vector<2x8xbf16>, vector<2x8xbf16>, vector<2x2xf32> -> vector<2x2xf32>
    %cst_2 = arith.constant 0.353553385 : f32
    %8 = vector.broadcast %cst_2 : f32 to vector<2x2xf32>
    %9 = arith.mulf %7, %8 : vector<2x2xf32>
    %cst_3 = arith.constant dense<0xFF800000> : vector<2xf32>
    %10 = vector.multi_reduction <maximumf>, %9, %cst_3 [1] : vector<2x2xf32> to vector<2xf32>
    %11 = vector.shape_cast %10 : vector<2xf32> to vector<2x1xf32>
    %12 = vector.broadcast %11 : vector<2x1xf32> to vector<2x2xf32>
    %13 = arith.subf %9, %12 : vector<2x2xf32>
    %14 = math.exp %13 : vector<2x2xf32>
    %cst_4 = arith.constant dense<0.000000e+00> : vector<2xf32>
    %15 = vector.multi_reduction <add>, %14, %cst_4 [1] : vector<2x2xf32> to vector<2xf32>
    %16 = vector.shape_cast %15 : vector<2xf32> to vector<2x1xf32>
    %17 = tpu.reciprocal %16 {approx = true} : vector<2x1xf32> -> vector<2x1xf32>
    %18 = vector.broadcast %17 : vector<2x1xf32> to vector<2x2xf32>
    %19 = arith.mulf %14, %18 : vector<2x2xf32>
    %20 = arith.truncf %19 : vector<2x2xf32> to vector<2x2xbf16>
    %21 = arith.truncf %4 : vector<2x8xf32> to vector<2x8xbf16>
    %cst_5 = arith.constant dense<0.000000e+00> : vector<2x8xf32>
    %22 = tpu.matmul %20, %21, %cst_5 {dimension_numbers = #tpu.dot_dimension_numbers<[1], [0], [0], [1], [0, 0, 1, 1], [], []>} : vector<2x2xbf16>, vector<2x8xbf16>, vector<2x8xf32> -> vector<2x8xf32>
    %23 = vector.extract_strided_slice %1 {offsets = [0, 8], sizes = [2, 8], strides = [1, 1]} : vector<2x96xf32> to vector<2x8xf32>
    %24 = vector.extract_strided_slice %1 {offsets = [0, 40], sizes = [2, 8], strides = [1, 1]} : vector<2x96xf32> to vector<2x8xf32>
    %25 = vector.extract_strided_slice %1 {offsets = [0, 72], sizes = [2, 8], strides = [1, 1]} : vector<2x96xf32> to vector<2x8xf32>
    %26 = arith.truncf %23 : vector<2x8xf32> to vector<2x8xbf16>
    %27 = arith.truncf %24 : vector<2x8xf32> to vector<2x8xbf16>
    %cst_6 = arith.constant dense<0.000000e+00> : vector<2x2xf32>
    %28 = tpu.matmul %26, %27, %cst_6 {dimension_numbers = #tpu.dot_dimension_numbers<[1], [1], [0], [0], [0, 0, 1, 0], [], []>} : vector<2x8xbf16>, vector<2x8xbf16>, vector<2x2xf32> -> vector<2x2xf32>
    %cst_7 = arith.constant 0.353553385 : f32
    %29 = vector.broadcast %cst_7 : f32 to vector<2x2xf32>
    %30 = arith.mulf %28, %29 : vector<2x2xf32>
    %cst_8 = arith.constant dense<0xFF800000> : vector<2xf32>
    %31 = vector.multi_reduction <maximumf>, %30, %cst_8 [1] : vector<2x2xf32> to vector<2xf32>
    %32 = vector.shape_cast %31 : vector<2xf32> to vector<2x1xf32>
    %33 = vector.broadcast %32 : vector<2x1xf32> to vector<2x2xf32>
    %34 = arith.subf %30, %33 : vector<2x2xf32>
    %35 = math.exp %34 : vector<2x2xf32>
    %cst_9 = arith.constant dense<0.000000e+00> : vector<2xf32>
    %36 = vector.multi_reduction <add>, %35, %cst_9 [1] : vector<2x2xf32> to vector<2xf32>
    %37 = vector.shape_cast %36 : vector<2xf32> to vector<2x1xf32>
    %38 = tpu.reciprocal %37 {approx = true} : vector<2x1xf32> -> vector<2x1xf32>
    %39 = vector.broadcast %38 : vector<2x1xf32> to vector<2x2xf32>
    %40 = arith.mulf %35, %39 : vector<2x2xf32>
    %41 = arith.truncf %40 : vector<2x2xf32> to vector<2x2xbf16>
    %42 = arith.truncf %25 : vector<2x8xf32> to vector<2x8xbf16>
    %cst_10 = arith.constant dense<0.000000e+00> : vector<2x8xf32>
    %43 = tpu.matmul %41, %42, %cst_10 {dimension_numbers = #tpu.dot_dimension_numbers<[1], [0], [0], [1], [0, 0, 1, 1], [], []>} : vector<2x2xbf16>, vector<2x8xbf16>, vector<2x8xf32> -> vector<2x8xf32>
    %44 = vector.extract_strided_slice %1 {offsets = [0, 16], sizes = [2, 8], strides = [1, 1]} : vector<2x96xf32> to vector<2x8xf32>
    %45 = vector.extract_strided_slice %1 {offsets = [0, 48], sizes = [2, 8], strides = [1, 1]} : vector<2x96xf32> to vector<2x8xf32>
    %46 = vector.extract_strided_slice %1 {offsets = [0, 80], sizes = [2, 8], strides = [1, 1]} : vector<2x96xf32> to vector<2x8xf32>
    %47 = arith.truncf %44 : vector<2x8xf32> to vector<2x8xbf16>
    %48 = arith.truncf %45 : vector<2x8xf32> to vector<2x8xbf16>
    %cst_11 = arith.constant dense<0.000000e+00> : vector<2x2xf32>
    %49 = tpu.matmul %47, %48, %cst_11 {dimension_numbers = #tpu.dot_dimension_numbers<[1], [1], [0], [0], [0, 0, 1, 0], [], []>} : vector<2x8xbf16>, vector<2x8xbf16>, vector<2x2xf32> -> vector<2x2xf32>
    %cst_12 = arith.constant 0.353553385 : f32
    %50 = vector.broadcast %cst_12 : f32 to vector<2x2xf32>
    %51 = arith.mulf %49, %50 : vector<2x2xf32>
    %cst_13 = arith.constant dense<0xFF800000> : vector<2xf32>
    %52 = vector.multi_reduction <maximumf>, %51, %cst_13 [1] : vector<2x2xf32> to vector<2xf32>
    %53 = vector.shape_cast %52 : vector<2xf32> to vector<2x1xf32>
    %54 = vector.broadcast %53 : vector<2x1xf32> to vector<2x2xf32>
    %55 = arith.subf %51, %54 : vector<2x2xf32>
    %56 = math.exp %55 : vector<2x2xf32>
    %cst_14 = arith.constant dense<0.000000e+00> : vector<2xf32>
    %57 = vector.multi_reduction <add>, %56, %cst_14 [1] : vector<2x2xf32> to vector<2xf32>
    %58 = vector.shape_cast %57 : vector<2xf32> to vector<2x1xf32>
    %59 = tpu.reciprocal %58 {approx = true} : vector<2x1xf32> -> vector<2x1xf32>
    %60 = vector.broadcast %59 : vector<2x1xf32> to vector<2x2xf32>
    %61 = arith.mulf %56, %60 : vector<2x2xf32>
    %62 = arith.truncf %61 : vector<2x2xf32> to vector<2x2xbf16>
    %63 = arith.truncf %46 : vector<2x8xf32> to vector<2x8xbf16>
    %cst_15 = arith.constant dense<0.000000e+00> : vector<2x8xf32>
    %64 = tpu.matmul %62, %63, %cst_15 {dimension_numbers = #tpu.dot_dimension_numbers<[1], [0], [0], [1], [0, 0, 1, 1], [], []>} : vector<2x2xbf16>, vector<2x8xbf16>, vector<2x8xf32> -> vector<2x8xf32>
    %65 = vector.extract_strided_slice %1 {offsets = [0, 24], sizes = [2, 8], strides = [1, 1]} : vector<2x96xf32> to vector<2x8xf32>
    %66 = vector.extract_strided_slice %1 {offsets = [0, 56], sizes = [2, 8], strides = [1, 1]} : vector<2x96xf32> to vector<2x8xf32>
    %67 = vector.extract_strided_slice %1 {offsets = [0, 88], sizes = [2, 8], strides = [1, 1]} : vector<2x96xf32> to vector<2x8xf32>
    %68 = arith.truncf %65 : vector<2x8xf32> to vector<2x8xbf16>
    %69 = arith.truncf %66 : vector<2x8xf32> to vector<2x8xbf16>
    %cst_16 = arith.constant dense<0.000000e+00> : vector<2x2xf32>
    %70 = tpu.matmul %68, %69, %cst_16 {dimension_numbers = #tpu.dot_dimension_numbers<[1], [1], [0], [0], [0, 0, 1, 0], [], []>} : vector<2x8xbf16>, vector<2x8xbf16>, vector<2x2xf32> -> vector<2x2xf32>
    %cst_17 = arith.constant 0.353553385 : f32
    %71 = vector.broadcast %cst_17 : f32 to vector<2x2xf32>
    %72 = arith.mulf %70, %71 : vector<2x2xf32>
    %cst_18 = arith.constant dense<0xFF800000> : vector<2xf32>
    %73 = vector.multi_reduction <maximumf>, %72, %cst_18 [1] : vector<2x2xf32> to vector<2xf32>
    %74 = vector.shape_cast %73 : vector<2xf32> to vector<2x1xf32>
    %75 = vector.broadcast %74 : vector<2x1xf32> to vector<2x2xf32>
    %76 = arith.subf %72, %75 : vector<2x2xf32>
    %77 = math.exp %76 : vector<2x2xf32>
    %cst_19 = arith.constant dense<0.000000e+00> : vector<2xf32>
    %78 = vector.multi_reduction <add>, %77, %cst_19 [1] : vector<2x2xf32> to vector<2xf32>
    %79 = vector.shape_cast %78 : vector<2xf32> to vector<2x1xf32>
    %80 = tpu.reciprocal %79 {approx = true} : vector<2x1xf32> -> vector<2x1xf32>
    %81 = vector.broadcast %80 : vector<2x1xf32> to vector<2x2xf32>
    %82 = arith.mulf %77, %81 : vector<2x2xf32>
    %83 = arith.truncf %82 : vector<2x2xf32> to vector<2x2xbf16>
    %84 = arith.truncf %67 : vector<2x8xf32> to vector<2x8xbf16>
    %cst_20 = arith.constant dense<0.000000e+00> : vector<2x8xf32>
    %85 = tpu.matmul %83, %84, %cst_20 {dimension_numbers = #tpu.dot_dimension_numbers<[1], [0], [0], [1], [0, 0, 1, 1], [], []>} : vector<2x2xbf16>, vector<2x8xbf16>, vector<2x8xf32> -> vector<2x8xf32>
    %86 = tpu.concatenate %22, %43, %64, %85 in 1 : vector<2x8xf32>, vector<2x8xf32>, vector<2x8xf32>, vector<2x8xf32> -> vector<2x32xf32>
    %c0_21 = arith.constant 0 : index
    %c0_22 = arith.constant 0 : index
    %c0_23 = arith.constant 0 : index
    %87 = vector.load %arg2[%c0_21, %c0_22, %c0_23] : memref<1x2x32xf32, #tpu.memory_space<vmem>>, vector<1x2x32xf32>
    %88 = vector.shape_cast %87 : vector<1x2x32xf32> to vector<2x32xf32>
    %89 = vector.shape_cast %86 : vector<2x32xf32> to vector<1x2x32xf32>
    tpu.vector_store %arg2[%c0_21, %c0_22, %c0_23], %89 {strides = array<i32>} : memref<1x2x32xf32, #tpu.memory_space<vmem>>, vector<1x2x32xf32>,
    return
  }
  func.func @transform_0(%arg0: i32) -> (i32, i32, i32) {
    %c0_i32 = arith.constant 0 : i32
    %c0_i32_0 = arith.constant 0 : i32
    %c0_i32_1 = arith.constant 0 : i32
    return %arg0, %c0_i32, %c0_i32_0 : i32, i32, i32
  }
  func.func @transform_1(%arg0: i32) -> (i32, i32, i32) {
    %c0_i32 = arith.constant 0 : i32
    %c0_i32_0 = arith.constant 0 : i32
    %c0_i32_1 = arith.constant 0 : i32
    return %arg0, %c0_i32, %c0_i32_0 : i32, i32, i32
  }
}

module attributes {stable_mosaic.version = 11 : i64} {
  func.func @_matmul_kernel(%arg0: i32, %arg1: i32, %arg2: i32, %arg3: memref<16x32xf32, #tpu.memory_space<vmem>>, %arg4: memref<32x32xf32, #tpu.memory_space<vmem>>, %arg5: memref<1x32xf32, #tpu.memory_space<vmem>>, %arg6: memref<16x32xf32, #tpu.memory_space<vmem>>, %arg7: memref<16x32xf32, #tpu.memory_space<vmem>>) attributes {dimension_semantics = [#tpu.dimension_semantics<parallel>, #tpu.dimension_semantics<parallel>, #tpu.dimension_semantics<arbitrary>], iteration_bounds = array<i64: 1, 1, 1>, scalar_prefetch = 0 : i64, scratch_operands = 1 : i64, tpu.core_type = #tpu.core_type<tc>, window_params = [{transform_indices = @transform_0, window_bounds = array<i64: 16, 32>}, {transform_indices = @transform_1, window_bounds = array<i64: 32, 32>}, {transform_indices = @transform_2, window_bounds = array<i64: 1, 32>}, {transform_indices = @transform_3, window_bounds = array<i64: 16, 32>}]} {
    %c0_i32 = arith.constant 0 : i32
    %0 = arith.cmpi eq, %arg2, %c0_i32 : i32
    %1 = arith.extui %0 : i1 to i32
    %c0_i32_0 = arith.constant 0 : i32
    %2 = arith.cmpi ne, %1, %c0_i32_0 : i32
    scf.if %2 {
      %cst_10 = arith.constant 0.000000e+00 : f32
      %14 = vector.broadcast %cst_10 : f32 to vector<16x32xf32>
      %c0_11 = arith.constant 0 : index
      %c0_12 = arith.constant 0 : index
      %15 = vector.load %arg7[%c0_11, %c0_12] : memref<16x32xf32, #tpu.memory_space<vmem>>, vector<16x32xf32>
      tpu.vector_store %arg7[%c0_11, %c0_12], %14 {strides = array<i32>} : memref<16x32xf32, #tpu.memory_space<vmem>>, vector<16x32xf32>,
    } else {
    }
    %c0 = arith.constant 0 : index
    %c0_1 = arith.constant 0 : index
    %3 = vector.load %arg7[%c0, %c0_1] : memref<16x32xf32, #tpu.memory_space<vmem>>, vector<16x32xf32>
    %c0_2 = arith.constant 0 : index
    %c0_3 = arith.constant 0 : index
    %4 = vector.load %arg3[%c0_2, %c0_3] : memref<16x32xf32, #tpu.memory_space<vmem>>, vector<16x32xf32>
    %5 = arith.truncf %4 : vector<16x32xf32> to vector<16x32xbf16>
    %c0_4 = arith.constant 0 : index
    %c0_5 = arith.constant 0 : index
    %6 = vector.load %arg4[%c0_4, %c0_5] : memref<32x32xf32, #tpu.memory_space<vmem>>, vector<32x32xf32>
    %7 = arith.truncf %6 : vector<32x32xf32> to vector<32x32xbf16>
    %cst = arith.constant dense<0.000000e+00> : vector<16x32xf32>
    %8 = tpu.matmul %5, %7, %cst {dimension_numbers = #tpu.dot_dimension_numbers<[1], [0], [0], [1], [0, 0, 1, 1], [], []>} : vector<16x32xbf16>, vector<32x32xbf16>, vector<16x32xf32> -> vector<16x32xf32>
    %9 = arith.addf %3, %8 : vector<16x32xf32>
    %c0_6 = arith.constant 0 : index
    %c0_7 = arith.constant 0 : index
    %10 = vector.load %arg7[%c0_6, %c0_7] : memref<16x32xf32, #tpu.memory_space<vmem>>, vector<16x32xf32>
    tpu.vector_store %arg7[%c0_6, %c0_7], %9 {strides = array<i32>} : memref<16x32xf32, #tpu.memory_space<vmem>>, vector<16x32xf32>,
    %c0_i32_8 = arith.constant 0 : i32
    %11 = arith.cmpi eq, %arg2, %c0_i32_8 : i32
    %12 = arith.extui %11 : i1 to i32
    %c0_i32_9 = arith.constant 0 : i32
    %13 = arith.cmpi ne, %12, %c0_i32_9 : i32
    scf.if %13 {
      %c0_10 = arith.constant 0 : index
      %c0_11 = arith.constant 0 : index
      %14 = vector.load %arg7[%c0_10, %c0_11] : memref<16x32xf32, #tpu.memory_space<vmem>>, vector<16x32xf32>
      %c0_12 = arith.constant 0 : index
      %c0_13 = arith.constant 0 : index
      %15 = vector.load %arg5[%c0_12, %c0_13] : memref<1x32xf32, #tpu.memory_space<vmem>>, vector<1x32xf32>
      %16 = vector.broadcast %15 : vector<1x32xf32> to vector<16x32xf32>
      %17 = arith.addf %14, %16 : vector<16x32xf32>
      %c0_14 = arith.constant 0 : index
      %c0_15 = arith.constant 0 : index
      %18 = vector.load %arg6[%c0_14, %c0_15] : memref<16x32xf32, #tpu.memory_space<vmem>>, vector<16x32xf32>
      tpu.vector_store %arg6[%c0_14, %c0_15], %17 {strides = array<i32>} : memref<16x32xf32, #tpu.memory_space<vmem>>, vector<16x32xf32>,
    } else {
    }
    return
  }
  func.func @transform_0(%arg0: i32, %arg1: i32, %arg2: i32) -> (i32, i32) {
    %c0_i32 = arith.constant 0 : i32
    return %arg0, %arg2 : i32, i32
  }
  func.func @transform_1(%arg0: i32, %arg1: i32, %arg2: i32) -> (i32, i32) {
    %c0_i32 = arith.constant 0 : i32
    return %arg2, %arg1 : i32, i32
  }
  func.func @transform_2(%arg0: i32, %arg1: i32, %arg2: i32) -> (i32, i32) {
    %c0_i32 = arith.constant 0 : i32
    %c0_i32_0 = arith.constant 0 : i32
    return %c0_i32, %arg1 : i32, i32
  }
  func.func @transform_3(%arg0: i32, %arg1: i32, %arg2: i32) -> (i32, i32) {
    %c0_i32 = arith.constant 0 : i32
    return %arg0, %arg1 : i32, i32
  }
}

module attributes {stable_mosaic.version = 11 : i64} {
  func.func @_matmul_kernel(%arg0: i32, %arg1: i32, %arg2: i32, %arg3: memref<16x64xf32, #tpu.memory_space<vmem>>, %arg4: memref<64x32xf32, #tpu.memory_space<vmem>>, %arg5: memref<1x32xf32, #tpu.memory_space<vmem>>, %arg6: memref<16x32xf32, #tpu.memory_space<vmem>>, %arg7: memref<16x32xf32, #tpu.memory_space<vmem>>, %arg8: memref<16x32xf32, #tpu.memory_space<vmem>>) attributes {dimension_semantics = [#tpu.dimension_semantics<parallel>, #tpu.dimension_semantics<parallel>, #tpu.dimension_semantics<arbitrary>], iteration_bounds = array<i64: 1, 1, 1>, scalar_prefetch = 0 : i64, scratch_operands = 1 : i64, tpu.core_type = #tpu.core_type<tc>, window_params = [{transform_indices = @transform_0, window_bounds = array<i64: 16, 64>}, {transform_indices = @transform_1, window_bounds = array<i64: 64, 32>}, {transform_indices = @transform_2, window_bounds = array<i64: 1, 32>}, {transform_indices = @transform_3, window_bounds = array<i64: 16, 32>}, {transform_indices = @transform_4, window_bounds = array<i64: 16, 32>}]} {
    %c0_i32 = arith.constant 0 : i32
    %0 = arith.cmpi eq, %arg2, %c0_i32 : i32
    %1 = arith.extui %0 : i1 to i32
    %c0_i32_0 = arith.constant 0 : i32
    %2 = arith.cmpi ne, %1, %c0_i32_0 : i32
    scf.if %2 {
      %cst_10 = arith.constant 0.000000e+00 : f32
      %14 = vector.broadcast %cst_10 : f32 to vector<16x32xf32>
      %c0_11 = arith.constant 0 : index
      %c0_12 = arith.constant 0 : index
      %15 = vector.load %arg8[%c0_11, %c0_12] : memref<16x32xf32, #tpu.memory_space<vmem>>, vector<16x32xf32>
      tpu.vector_store %arg8[%c0_11, %c0_12], %14 {strides = array<i32>} : memref<16x32xf32, #tpu.memory_space<vmem>>, vector<16x32xf32>,
    } else {
    }
    %c0 = arith.constant 0 : index
    %c0_1 = arith.constant 0 : index
    %3 = vector.load %arg8[%c0, %c0_1] : memref<16x32xf32, #tpu.memory_space<vmem>>, vector<16x32xf32>
    %c0_2 = arith.constant 0 : index
    %c0_3 = arith.constant 0 : index
    %4 = vector.load %arg3[%c0_2, %c0_3] : memref<16x64xf32, #tpu.memory_space<vmem>>, vector<16x64xf32>
    %5 = arith.truncf %4 : vector<16x64xf32> to vector<16x64xbf16>
    %c0_4 = arith.constant 0 : index
    %c0_5 = arith.constant 0 : index
    %6 = vector.load %arg4[%c0_4, %c0_5] : memref<64x32xf32, #tpu.memory_space<vmem>>, vector<64x32xf32>
    %7 = arith.truncf %6 : vector<64x32xf32> to vector<64x32xbf16>
    %cst = arith.constant dense<0.000000e+00> : vector<16x32xf32>
    %8 = tpu.matmul %5, %7, %cst {dimension_numbers = #tpu.dot_dimension_numbers<[1], [0], [0], [1], [0, 0, 1, 1], [], []>} : vector<16x64xbf16>, vector<64x32xbf16>, vector<16x32xf32> -> vector<16x32xf32>
    %9 = arith.addf %3, %8 : vector<16x32xf32>
    %c0_6 = arith.constant 0 : index
    %c0_7 = arith.constant 0 : index
    %10 = vector.load %arg8[%c0_6, %c0_7] : memref<16x32xf32, #tpu.memory_space<vmem>>, vector<16x32xf32>
    tpu.vector_store %arg8[%c0_6, %c0_7], %9 {strides = array<i32>} : memref<16x32xf32, #tpu.memory_space<vmem>>, vector<16x32xf32>,
    %c0_i32_8 = arith.constant 0 : i32
    %11 = arith.cmpi eq, %arg2, %c0_i32_8 : i32
    %12 = arith.extui %11 : i1 to i32
    %c0_i32_9 = arith.constant 0 : i32
    %13 = arith.cmpi ne, %12, %c0_i32_9 : i32
    scf.if %13 {
      %c0_10 = arith.constant 0 : index
      %c0_11 = arith.constant 0 : index
      %14 = vector.load %arg8[%c0_10, %c0_11] : memref<16x32xf32, #tpu.memory_space<vmem>>, vector<16x32xf32>
      %c0_12 = arith.constant 0 : index
      %c0_13 = arith.constant 0 : index
      %15 = vector.load %arg5[%c0_12, %c0_13] : memref<1x32xf32, #tpu.memory_space<vmem>>, vector<1x32xf32>
      %16 = vector.broadcast %15 : vector<1x32xf32> to vector<16x32xf32>
      %17 = arith.addf %14, %16 : vector<16x32xf32>
      %c0_14 = arith.constant 0 : index
      %c0_15 = arith.constant 0 : index
      %18 = vector.load %arg6[%c0_14, %c0_15] : memref<16x32xf32, #tpu.memory_space<vmem>>, vector<16x32xf32>
      %19 = arith.addf %17, %18 : vector<16x32xf32>
      %c0_16 = arith.constant 0 : index
      %c0_17 = arith.constant 0 : index
      %20 = vector.load %arg7[%c0_16, %c0_17] : memref<16x32xf32, #tpu.memory_space<vmem>>, vector<16x32xf32>
      tpu.vector_store %arg7[%c0_16, %c0_17], %19 {strides = array<i32>} : memref<16x32xf32, #tpu.memory_space<vmem>>, vector<16x32xf32>,
    } else {
    }
    return
  }
  func.func @transform_0(%arg0: i32, %arg1: i32, %arg2: i32) -> (i32, i32) {
    %c0_i32 = arith.constant 0 : i32
    return %arg0, %arg2 : i32, i32
  }
  func.func @transform_1(%arg0: i32, %arg1: i32, %arg2: i32) -> (i32, i32) {
    %c0_i32 = arith.constant 0 : i32
    return %arg2, %arg1 : i32, i32
  }
  func.func @transform_2(%arg0: i32, %arg1: i32, %arg2: i32) -> (i32, i32) {
    %c0_i32 = arith.constant 0 : i32
    %c0_i32_0 = arith.constant 0 : i32
    return %c0_i32, %arg1 : i32, i32
  }
  func.func @transform_3(%arg0: i32, %arg1: i32, %arg2: i32) -> (i32, i32) {
    %c0_i32 = arith.constant 0 : i32
    return %arg0, %arg1 : i32, i32
  }
  func.func @transform_4(%arg0: i32, %arg1: i32, %arg2: i32) -> (i32, i32) {
    %c0_i32 = arith.constant 0 : i32
    return %arg0, %arg1 : i32, i32
  }
}

module attributes {stable_mosaic.version = 11 : i64} {
  func.func @_matmul_kernel(%arg0: i32, %arg1: i32, %arg2: i32, %arg3: memref<16x32xf32, #tpu.memory_space<vmem>>, %arg4: memref<32x64xf32, #tpu.memory_space<vmem>>, %arg5: memref<1x64xf32, #tpu.memory_space<vmem>>, %arg6: memref<16x64xf32, #tpu.memory_space<vmem>>, %arg7: memref<16x64xf32, #tpu.memory_space<vmem>>) attributes {dimension_semantics = [#tpu.dimension_semantics<parallel>, #tpu.dimension_semantics<parallel>, #tpu.dimension_semantics<arbitrary>], iteration_bounds = array<i64: 1, 1, 1>, scalar_prefetch = 0 : i64, scratch_operands = 1 : i64, tpu.core_type = #tpu.core_type<tc>, window_params = [{transform_indices = @transform_0, window_bounds = array<i64: 16, 32>}, {transform_indices = @transform_1, window_bounds = array<i64: 32, 64>}, {transform_indices = @transform_2, window_bounds = array<i64: 1, 64>}, {transform_indices = @transform_3, window_bounds = array<i64: 16, 64>}]} {
    %c0_i32 = arith.constant 0 : i32
    %0 = arith.cmpi eq, %arg2, %c0_i32 : i32
    %1 = arith.extui %0 : i1 to i32
    %c0_i32_0 = arith.constant 0 : i32
    %2 = arith.cmpi ne, %1, %c0_i32_0 : i32
    scf.if %2 {
      %cst_10 = arith.constant 0.000000e+00 : f32
      %14 = vector.broadcast %cst_10 : f32 to vector<16x64xf32>
      %c0_11 = arith.constant 0 : index
      %c0_12 = arith.constant 0 : index
      %15 = vector.load %arg7[%c0_11, %c0_12] : memref<16x64xf32, #tpu.memory_space<vmem>>, vector<16x64xf32>
      tpu.vector_store %arg7[%c0_11, %c0_12], %14 {strides = array<i32>} : memref<16x64xf32, #tpu.memory_space<vmem>>, vector<16x64xf32>,
    } else {
    }
    %c0 = arith.constant 0 : index
    %c0_1 = arith.constant 0 : index
    %3 = vector.load %arg7[%c0, %c0_1] : memref<16x64xf32, #tpu.memory_space<vmem>>, vector<16x64xf32>
    %c0_2 = arith.constant 0 : index
    %c0_3 = arith.constant 0 : index
    %4 = vector.load %arg3[%c0_2, %c0_3] : memref<16x32xf32, #tpu.memory_space<vmem>>, vector<16x32xf32>
    %5 = arith.truncf %4 : vector<16x32xf32> to vector<16x32xbf16>
    %c0_4 = arith.constant 0 : index
    %c0_5 = arith.constant 0 : index
    %6 = vector.load %arg4[%c0_4, %c0_5] : memref<32x64xf32, #tpu.memory_space<vmem>>, vector<32x64xf32>
    %7 = arith.truncf %6 : vector<32x64xf32> to vector<32x64xbf16>
    %cst = arith.constant dense<0.000000e+00> : vector<16x64xf32>
    %8 = tpu.matmul %5, %7, %cst {dimension_numbers = #tpu.dot_dimension_numbers<[1], [0], [0], [1], [0, 0, 1, 1], [], []>} : vector<16x32xbf16>, vector<32x64xbf16>, vector<16x64xf32> -> vector<16x64xf32>
    %9 = arith.addf %3, %8 : vector<16x64xf32>
    %c0_6 = arith.constant 0 : index
    %c0_7 = arith.constant 0 : index
    %10 = vector.load %arg7[%c0_6, %c0_7] : memref<16x64xf32, #tpu.memory_space<vmem>>, vector<16x64xf32>
    tpu.vector_store %arg7[%c0_6, %c0_7], %9 {strides = array<i32>} : memref<16x64xf32, #tpu.memory_space<vmem>>, vector<16x64xf32>,
    %c0_i32_8 = arith.constant 0 : i32
    %11 = arith.cmpi eq, %arg2, %c0_i32_8 : i32
    %12 = arith.extui %11 : i1 to i32
    %c0_i32_9 = arith.constant 0 : i32
    %13 = arith.cmpi ne, %12, %c0_i32_9 : i32
    scf.if %13 {
      %c0_10 = arith.constant 0 : index
      %c0_11 = arith.constant 0 : index
      %14 = vector.load %arg7[%c0_10, %c0_11] : memref<16x64xf32, #tpu.memory_space<vmem>>, vector<16x64xf32>
      %c0_12 = arith.constant 0 : index
      %c0_13 = arith.constant 0 : index
      %15 = vector.load %arg5[%c0_12, %c0_13] : memref<1x64xf32, #tpu.memory_space<vmem>>, vector<1x64xf32>
      %16 = vector.broadcast %15 : vector<1x64xf32> to vector<16x64xf32>
      %17 = arith.addf %14, %16 : vector<16x64xf32>
      %cst_14 = arith.constant 0.000000e+00 : f32
      %18 = vector.broadcast %cst_14 : f32 to vector<16x64xf32>
      %19 = arith.maximumf %17, %18 : vector<16x64xf32>
      %c0_15 = arith.constant 0 : index
      %c0_16 = arith.constant 0 : index
      %20 = vector.load %arg6[%c0_15, %c0_16] : memref<16x64xf32, #tpu.memory_space<vmem>>, vector<16x64xf32>
      tpu.vector_store %arg6[%c0_15, %c0_16], %19 {strides = array<i32>} : memref<16x64xf32, #tpu.memory_space<vmem>>, vector<16x64xf32>,
    } else {
    }
    return
  }
  func.func @transform_0(%arg0: i32, %arg1: i32, %arg2: i32) -> (i32, i32) {
    %c0_i32 = arith.constant 0 : i32
    return %arg0, %arg2 : i32, i32
  }
  func.func @transform_1(%arg0: i32, %arg1: i32, %arg2: i32) -> (i32, i32) {
    %c0_i32 = arith.constant 0 : i32
    return %arg2, %arg1 : i32, i32
  }
  func.func @transform_2(%arg0: i32, %arg1: i32, %arg2: i32) -> (i32, i32) {
    %c0_i32 = arith.constant 0 : i32
    %c0_i32_0 = arith.constant 0 : i32
    return %c0_i32, %arg1 : i32, i32
  }
  func.func @transform_3(%arg0: i32, %arg1: i32, %arg2: i32) -> (i32, i32) {
    %c0_i32 = arith.constant 0 : i32
    return %arg0, %arg1 : i32, i32
  }
}

</mosaic_0001>

<bundles_post_ra>
// kernel: gpt2_with_future_forward.28
= control target key start
LH: loop header
LB: loop body
LE: loop exit
PB: predicated region body
PF: predicated region fallthrough
CT: control target
= control target key end

     0   :  { %vm22_vm0 = vcmask 261120   ;;  %v124_v0 = vmov 0.0   ;;  %vm125_vm1 = vmmov 0   ;;  %s191_s1 = inlined_call_operand.vmem [shape: f32[32,32], index: 1, kind: input, shape index: {}]   ;;  %s192_s0 = inlined_call_operand.vmem [shape: f32[16,32], index: 0, kind: input, shape index: {}]   ;;  %s193_s2 = inlined_call_operand.vmem [shape: f32[1,32], index: 2, kind: input, shape index: {}]   ;;  %s194_s3 = inlined_call_operand.vmem [shape: f32[16,32], index: 3, kind: input, shape index: {}]   ;;  %s195_s4 = inlined_call_operand.vmem [shape: f32[16,32], index: 4, kind: output, shape index: {}]  }
   0x1   :  { %114 = vmatprep.subr.bf16.mxu0 %v124_v0  ;;  %v30_v1 = vld [vmem:[%s191_s1] sm:$0xff]  ;;  %v31_v2 = vld [vmem:[%s191_s1 + $0x8] sm:$0xff]  ;;  %v32_v3 = vld [vmem:[%s191_s1 + $0x10] sm:$0xff]  ;;  %118 = vmatprep.mubr.msk.bf16.mxu0 %vm125_vm1, %v124_v0  ;;  %23 = vst.msk [vmem:[#allocation2] sm:$0xff] %vm22_vm0, %v124_v0 }
   0x2   :  { %24 = vst.msk [vmem:[#allocation2 + $0x8] sm:$0xff] %vm22_vm0, %v124_v0  ;;  %v34_v4 = vpack.c.bf16 %v31_v2, %v30_v1  ;;  %v33_v5 = vld [vmem:[%s191_s1 + $0x18] sm:$0xff]  ;;  %v27_v7 = vld [vmem:[%s192_s0] sm:$0xff]  ;;  %v28_v8 = vld [vmem:[%s192_s0 + $0x8] sm:$0xff] }
   0x3   :  { %v35_v6 = vpack.c.bf16 %v33_v5, %v32_v3  ;;  %v29_v9 = vpack.c.bf16 %v28_v8, %v27_v7  ;;  %v110_v18 = vld [vmem:[%s193_s2] ss:$0 sm:$0xff]  ;;  %v100_v23 = vld [vmem:[%s194_s3 + $0x8] sm:$0xff] }
   0x4   :  { %115 = vmatpush3.bf16.msra.mxu0 %v34_v4  ;;  %v99_v20 = vld [vmem:[%s194_s3] sm:$0xff] }
   0x5   :  { %116 = vmatprep.subr.bf16.mxu0 %v124_v0 }
   0x8   :  { %117 = vmatpush3.bf16.msra.mxu0 %v35_v6  ;;  %v25_v10 = vld [vmem:[#allocation2] sm:$0xff] }
   0x9   :  { %v26_v12 = vld [vmem:[#allocation2 + $0x8] sm:$0xff] }
   0xb   :  { %119 = vmatmul.mubr.msk.bf16.vlgmr.msra.gmra.mrb[0].mxu0 %vm22_vm0, %v29_v9 }
  0xde   :  { %v74_v11 = vpop.f32.mrb[0].mxu0 }
  0xdf   :  { %v81_v13 = vadd.f32 %v74_v11, %v25_v10  ;;  %v120_v14 = vpop.f32.mrb[1].mxu0 }
  0xe0   :  { %v77_v15 = vpop.f32.mrb[2].mxu0 }
  0xe1   :  { %83 = vst.msk [vmem:[#allocation2] sm:$0xff] %vm22_vm0, %v81_v13  ;;  %v82_v16 = vadd.f32 %v77_v15, %v26_v12  ;;  %v121_v17 = vpop.f32.mrb[3].mxu0 }
  0xe3   :  { %84 = vst.msk [vmem:[#allocation2 + $0x8] sm:$0xff] %vm22_vm0, %v82_v16 }
  0xe8   :  { %v88_v19 = vld [vmem:[#allocation2] sm:$0xff] }
  0xe9   :  { %v97_v21 = vadd.f32 %v110_v18, %v88_v19 }
  0xea   :  { %v89_v22 = vld [vmem:[#allocation2 + $0x8] sm:$0xff] }
  0xeb   :  { %v101_v24 = vadd.f32 %v99_v20, %v97_v21  ;;  %v98_v25 = vadd.f32 %v110_v18, %v89_v22 }
  0xed   :  { %103 = vst.msk [vmem:[%s195_s4] sm:$0xff] %vm22_vm0, %v101_v24  ;;  %v102_v26 = vadd.f32 %v100_v23, %v98_v25 }
  0xef   :  { %104 = vst.msk [vmem:[%s195_s4 + $0x8] sm:$0xff] %vm22_vm0, %v102_v26 }

// kernel: gpt2_with_future_forward.26
= control target key start
LH: loop header
LB: loop body
LE: loop exit
PB: predicated region body
PF: predicated region fallthrough
CT: control target
= control target key end

     0   :  { %vm23_vm0 = vcmask 261120   ;;  %v155_v17 = vmov 0.0   ;;  %vm156_vm1 = vmmov 0   ;;  %vm127_vm2 = vcmask 785408   ;;  %s225_s0 = inlined_call_operand.vmem [shape: f32[16,32], index: 0, kind: input, shape index: {}]   ;;  %s226_s3 = inlined_call_operand.vmem [shape: f32[32,96], index: 3, kind: input, shape index: {}]   ;;  %s227_s1 = inlined_call_operand.vmem [shape: f32[1,32], index: 1, kind: input, shape index: {}]   ;;  %s228_s2 = inlined_call_operand.vmem [shape: f32[1,32], index: 2, kind: input, shape index: {}]   ;;  %s229_s4 = inlined_call_operand.vmem [shape: f32[1,96], index: 4, kind: input, shape index: {}]   ;;  %s230_s5 = inlined_call_operand.vmem [shape: f32[16,96], index: 5, kind: output, shape index: {}]  }
   0x1   :  { %v21_v0 = vld [vmem:[%s225_s0] sm:$0xff]  ;;  %v22_v1 = vld [vmem:[%s225_s0 + $0x8] sm:$0xff]  ;;  %141 = vmatprep.subr.bf16.mxu0 %v155_v17  ;;  %v72_v18 = vld [vmem:[%s226_s3 + $0x10] sm:$0xff]  ;;  %145 = vmatprep.mubr.msk.bf16.mxu0 %vm156_vm1, %v155_v17 }
   0x2   :  { %v24_v2 = vsel %vm23_vm0, %v21_v0, 0.0  ;;  %v27_v3 = vsel %vm23_vm0, %v22_v1, 0.0  ;;  %v70_v14 = vld [vmem:[%s226_s3] sm:$0xff]  ;;  %v71_v15 = vld [vmem:[%s226_s3 + $0x8] sm:$0xff]  ;;  %v73_v19 = vld [vmem:[%s226_s3 + $0x18] sm:$0xff] }
   0x3   :  { %25 = vadd.xlane.f32.xlu0 %v24_v2  ;;  %v74_v16 = vpack.c.bf16 %v71_v15, %v70_v14  ;;  %v75_v20 = vpack.c.bf16 %v73_v19, %v72_v18  ;;  %v134_v29 = vld [vmem:[%s227_s1] ss:$0 sm:$0xff] }
   0x4   :  { %v135_v33 = vld [vmem:[%s228_s2] ss:$0 sm:$0xff] }
   0x5   :  { %142 = vmatpush3.bf16.msra.mxu0 %v74_v16  ;;  %v136_v38 = vld [vmem:[%s229_s4] ss:$0 sm:$0xff] }
   0x6   :  { %143 = vmatprep.subr.bf16.mxu0 %v155_v17 }
   0x7   :  { %28 = vadd.xlane.f32.xlu0 %v27_v3 }
   0x9   :  { %144 = vmatpush3.bf16.msra.mxu0 %v75_v20 }
  0x90   :  { %v26_v4 = vpop.xlane.xlu0 %25 }
  0x91   :  { %v31_v5 = vmul.f32 0.03125, %v26_v4 }
  0x93   :  { %v33_v6 = vsub.f32 %v21_v0, %v31_v5 }
  0x94   :  { %v29_v7 = vpop.xlane.xlu0 %28 }
  0x95   :  { %v32_v8 = vmul.f32 0.03125, %v29_v7  ;;  %v35_v9 = vmul.f32 %v33_v6, %v33_v6 }
  0x97   :  { %v34_v10 = vsub.f32 %v22_v1, %v32_v8  ;;  %v37_v11 = vsel %vm23_vm0, %v35_v9, 0.0 }
  0x98   :  { %38 = vadd.xlane.f32.xlu1 %v37_v11 }
  0x99   :  { %v36_v12 = vmul.f32 %v34_v10, %v34_v10 }
  0x9b   :  { %v40_v13 = vsel %vm23_vm0, %v36_v12, 0.0 }
  0x9c   :  { %41 = vadd.xlane.f32.xlu1 %v40_v13 }
 0x125   :  { %v39_v21 = vpop.xlane.xlu1 %38 }
 0x126   :  { %v43_v22 = vmul.f32 0.03125, %v39_v21 }
 0x128   :  { %v45_v23 = vadd.f32 1e-05, %v43_v22 }
 0x129   :  { %v42_v24 = vpop.xlane.xlu1 %41 }
 0x12a   :  { %151 = vrsqrt.f32 %v45_v23  ;;  %v44_v25 = vmul.f32 0.03125, %v42_v24 }
 0x12c   :  { %v46_v26 = vadd.f32 1e-05, %v44_v25 }
 0x12e   :  { %153 = vrsqrt.f32 %v46_v26 }
 0x134   :  { %v152_v27 = vpop.eup %151 }
 0x135   :  { %v49_v28 = vmul.f32 %v152_v27, %v33_v6 }
 0x137   :  { %v58_v32 = vmul.f32 %v134_v29, %v49_v28 }
 0x138   :  { %v154_v30 = vpop.eup %153 }
 0x139   :  { %v50_v31 = vmul.f32 %v154_v30, %v34_v10  ;;  %v67_v35 = vadd.f32 %v135_v33, %v58_v32 }
 0x13b   :  { %v59_v34 = vmul.f32 %v134_v29, %v50_v31 }
 0x13d   :  { %v68_v36 = vadd.f32 %v135_v33, %v59_v34 }
 0x13f   :  { %v69_v37 = vpack.c.bf16 %v68_v36, %v67_v35 }
 0x141   :  { %146 = vmatmul.mubr.msk.bf16.vlgmr.msra.gmra.mrb[0].mxu0 %vm23_vm0, %v69_v37 }
 0x214   :  { %v120_v39 = vpop.f32.mrb[0].mxu0 }
 0x215   :  { %v121_v40 = vadd.f32 %v136_v38, %v120_v39  ;;  %v147_v41 = vpop.f32.mrb[1].mxu0 }
 0x216   :  { %v123_v42 = vpop.f32.mrb[2].mxu0 }
 0x217   :  { %128 = vst.msk [vmem:[%s230_s5] sm:$0xff] %vm127_vm2, %v121_v40  ;;  %v124_v43 = vadd.f32 %v136_v38, %v123_v42  ;;  %v148_v44 = vpop.f32.mrb[3].mxu0 }
 0x219   :  { %129 = vst.msk [vmem:[%s230_s5 + $0x8] sm:$0xff] %vm127_vm2, %v124_v43 }

// kernel: gpt2_with_future_forward.29
= control target key start
LH: loop header
LB: loop body
LE: loop exit
PB: predicated region body
PF: predicated region fallthrough
CT: control target
= control target key end

     0   :  { %vm23_vm0 = vcmask 261120   ;;  %v176_v17 = vmov 0.0   ;;  %vm177_vm1 = vmmov 0   ;;  %s246_s0 = inlined_call_operand.vmem [shape: f32[16,32], index: 0, kind: input, shape index: {}]   ;;  %s247_s3 = inlined_call_operand.vmem [shape: f32[32,128], index: 3, kind: input, shape index: {}]   ;;  %s248_s1 = inlined_call_operand.vmem [shape: f32[1,32], index: 1, kind: input, shape index: {}]   ;;  %s249_s2 = inlined_call_operand.vmem [shape: f32[1,32], index: 2, kind: input, shape index: {}]   ;;  %s250_s4 = inlined_call_operand.vmem [shape: f32[1,128], index: 4, kind: input, shape index: {}]   ;;  %s251_s5 = inlined_call_operand.vmem [shape: f32[16,128], index: 5, kind: output, shape index: {}]  }
   0x1   :  { %v21_v0 = vld [vmem:[%s246_s0] sm:$0xff]  ;;  %v22_v1 = vld [vmem:[%s246_s0 + $0x8] sm:$0xff]  ;;  %158 = vmatprep.subr.bf16.mxu0 %v176_v17  ;;  %v72_v18 = vld [vmem:[%s247_s3 + $0x10] sm:$0xff]  ;;  %162 = vmatprep.mubr.msk.bf16.mxu0 %vm177_vm1, %v176_v17 }
   0x2   :  { %v24_v2 = vsel %vm23_vm0, %v21_v0, 0.0  ;;  %v27_v3 = vsel %vm23_vm0, %v22_v1, 0.0  ;;  %v70_v14 = vld [vmem:[%s247_s3] sm:$0xff]  ;;  %v71_v15 = vld [vmem:[%s247_s3 + $0x8] sm:$0xff]  ;;  %v73_v19 = vld [vmem:[%s247_s3 + $0x18] sm:$0xff] }
   0x3   :  { %25 = vadd.xlane.f32.xlu0 %v24_v2  ;;  %v74_v16 = vpack.c.bf16 %v71_v15, %v70_v14  ;;  %v75_v20 = vpack.c.bf16 %v73_v19, %v72_v18  ;;  %v151_v29 = vld [vmem:[%s248_s1] ss:$0 sm:$0xff] }
   0x4   :  { %v152_v33 = vld [vmem:[%s249_s2] ss:$0 sm:$0xff] }
   0x5   :  { %159 = vmatpush3.bf16.msra.mxu0 %v74_v16  ;;  %v153_v38 = vld [vmem:[%s250_s4] ss:$0 sm:$0xff] }
   0x6   :  { %160 = vmatprep.subr.bf16.mxu0 %v176_v17 }
   0x7   :  { %28 = vadd.xlane.f32.xlu0 %v27_v3 }
   0x9   :  { %161 = vmatpush3.bf16.msra.mxu0 %v75_v20 }
  0x90   :  { %v26_v4 = vpop.xlane.xlu0 %25 }
  0x91   :  { %v31_v5 = vmul.f32 0.03125, %v26_v4 }
  0x93   :  { %v33_v6 = vsub.f32 %v21_v0, %v31_v5 }
  0x94   :  { %v29_v7 = vpop.xlane.xlu0 %28 }
  0x95   :  { %v32_v8 = vmul.f32 0.03125, %v29_v7  ;;  %v35_v9 = vmul.f32 %v33_v6, %v33_v6 }
  0x97   :  { %v34_v10 = vsub.f32 %v22_v1, %v32_v8  ;;  %v37_v11 = vsel %vm23_vm0, %v35_v9, 0.0 }
  0x98   :  { %38 = vadd.xlane.f32.xlu1 %v37_v11 }
  0x99   :  { %v36_v12 = vmul.f32 %v34_v10, %v34_v10 }
  0x9b   :  { %v40_v13 = vsel %vm23_vm0, %v36_v12, 0.0 }
  0x9c   :  { %41 = vadd.xlane.f32.xlu1 %v40_v13 }
 0x125   :  { %v39_v21 = vpop.xlane.xlu1 %38 }
 0x126   :  { %v43_v22 = vmul.f32 0.03125, %v39_v21 }
 0x128   :  { %v45_v23 = vadd.f32 1e-05, %v43_v22 }
 0x129   :  { %v42_v24 = vpop.xlane.xlu1 %41 }
 0x12a   :  { %168 = vrsqrt.f32 %v45_v23  ;;  %v44_v25 = vmul.f32 0.03125, %v42_v24 }
 0x12c   :  { %v46_v26 = vadd.f32 1e-05, %v44_v25 }
 0x12e   :  { %170 = vrsqrt.f32 %v46_v26 }
 0x134   :  { %v169_v27 = vpop.eup %168 }
 0x135   :  { %v49_v28 = vmul.f32 %v169_v27, %v33_v6 }
 0x137   :  { %v58_v32 = vmul.f32 %v151_v29, %v49_v28 }
 0x138   :  { %v171_v30 = vpop.eup %170 }
 0x139   :  { %v50_v31 = vmul.f32 %v171_v30, %v34_v10  ;;  %v67_v35 = vadd.f32 %v152_v33, %v58_v32 }
 0x13b   :  { %v59_v34 = vmul.f32 %v151_v29, %v50_v31 }
 0x13d   :  { %v68_v36 = vadd.f32 %v152_v33, %v59_v34 }
 0x13f   :  { %v69_v37 = vpack.c.bf16 %v68_v36, %v67_v35 }
 0x141   :  { %163 = vmatmul.mubr.msk.bf16.vlgmr.msra.gmra.mrb[0].mxu0 %vm23_vm0, %v69_v37 }
 0x214   :  { %v120_v39 = vpop.f32.mrb[0].mxu0 }
 0x215   :  { %v121_v40 = vadd.f32 %v153_v38, %v120_v39  ;;  %v164_v41 = vpop.f32.mrb[1].mxu0 }
 0x216   :  { %v123_v42 = vpop.f32.mrb[2].mxu0 }
 0x217   :  { %v129_v43 = vmul.f32 0.044715, %v121_v40  ;;  %v124_v44 = vadd.f32 %v153_v38, %v123_v42  ;;  %v165_v45 = vpop.f32.mrb[3].mxu0  ;;  %v127_v56 = vmul.f32 0.5, %v121_v40 }
 0x219   :  { %v131_v46 = vmul.f32 %v129_v43, %v121_v40  ;;  %v130_v47 = vmul.f32 0.044715, %v124_v44  ;;  %v128_v60 = vmul.f32 0.5, %v124_v44 }
 0x21b   :  { %v133_v48 = vmul.f32 %v131_v46, %v121_v40  ;;  %v132_v49 = vmul.f32 %v130_v47, %v124_v44 }
 0x21d   :  { %v135_v50 = vadd.f32 %v133_v48, %v121_v40  ;;  %v134_v51 = vmul.f32 %v132_v49, %v124_v44 }
 0x21f   :  { %v137_v52 = vmul.f32 0.7978846, %v135_v50  ;;  %v136_v53 = vadd.f32 %v134_v51, %v124_v44 }
 0x221   :  { %172 = vtanh.f32 %v137_v52  ;;  %v138_v54 = vmul.f32 0.7978846, %v136_v53 }
 0x223   :  { %174 = vtanh.f32 %v138_v54 }
 0x22b   :  { %v173_v55 = vpop.eup %172 }
 0x22c   :  { %v141_v57 = vadd.f32 1.0, %v173_v55 }
 0x22d   :  { %v175_v58 = vpop.eup %174 }
 0x22e   :  { %v143_v59 = vmul.f32 %v141_v57, %v127_v56  ;;  %v142_v61 = vadd.f32 1.0, %v175_v58 }
 0x230   :  { %145 = vst [vmem:[%s251_s5] sm:$0xff] %v143_v59  ;;  %v144_v62 = vmul.f32 %v142_v61, %v128_v60 }
 0x232   :  { %146 = vst [vmem:[%s251_s5 + $0x8] sm:$0xff] %v144_v62 }

// kernel: gpt2_with_future_forward.27
= control target key start
LH: loop header
LB: loop body
LE: loop exit
PB: predicated region body
PF: predicated region fallthrough
CT: control target
= control target key end

     0   :  { %s796_s6 = smov 0   ;;  %s904_s0 = inlined_call_operand.vmem [shape: f32[2,8,96], index: 0, kind: input, shape index: {}]   ;;  %s905_s1 = inlined_call_operand.vmem [shape: f32[2,8,32], index: 1, kind: output, shape index: {}]  }
   0x1 LB: > { %s641_s7 = sadd.s32 4294967295, %s768_s6   ;;  %p645_p0 = scmp.ge.s32.totalorder %s768_s6, 1  ;;  %s768_s6 = sphi %s796_s6, %s11_s6  }
   0x2   : > { %p86_p1 = scmp.lt.s32.totalorder %s768_s6, 3 }
   0x4   : > { %p87_p2 = pnand %p645_p0, %p86_p1 }
   0x5   : > { %p104_p3 = scmp.lt.s32.totalorder (!%p87_p2), %s641_s7, 1  ;;  %v770_v0 = vmov (!%p87_p2), 0.0   ;;  %vm771_vm0 = vmmov (!%p87_p2), 0   ;;  %s772_s12 = smov (!%p87_p2), 96   ;;  %vm123_vm1 = vcmask (!%p87_p2), 64512   ;;  %v114_v5 = vlaneseq (!%p87_p2) }
   0x6   : > { %90 = sbr.rel (%p87_p2) target bundleno = 1602 (0x642), region = 24  ;;  %674 = vmatprep.subr.bf16.mxu0 (!%p87_p2), %v770_v0  ;;  %676 = vmatprep.mubr.msk.bf16.mxu0 (!%p87_p2), %vm771_vm0, %v770_v0  ;;  %s773_s13 = smov (!%p87_p2), 64   ;;  %vm189_vm3 = vcmask (!%p87_p2), 1043456   ;;  %vm582_vm4 = vcmask (!%p87_p2), 130048   ;;  %vm584_vm5 = vcmask (!%p87_p2), 195584   ;;  %vm586_vm6 = vcmask (!%p87_p2), 261120  }
   0x7   : > { %680 = vmatprep.subr.bf16.mxu1 (!%p87_p2), %v770_v0  ;;  %682 = vmatprep.mubr.msk.bf16.mxu1 (!%p87_p2), %vm771_vm0, %v770_v0  ;;  %s774_s14 = smov (!%p87_p2), 88   ;;  %v829_v6 = vshrl.u32 (!%p87_p2), %v114_v5, 7  ;;  %v831_v7 = vand.u32 (!%p87_p2), 127, %v114_v5  ;;  %s775_s15 = smov (!%p87_p2), 72  }
   0x8   : > { %s776_s16 = smov (!%p87_p2), 120   ;;  %s777_s17 = smov (!%p87_p2), 80  }
   0x9   : > { %vm118_vm2 = vcmp.le.s32.totalorder (!%p87_p2), %v831_v7, %v829_v6  ;;  %s778_s18 = smov (!%p87_p2), 112   ;;  %s779_s19 = smov (!%p87_p2), 104  }
   0xa   : > { %s780_s20 = smov (!%p87_p2), 56   ;;  %s781_s21 = smov (!%p87_p2), 48  }
   0xb   : > { %s782_s22 = smov (!%p87_p2), 40   ;;  %s783_s23 = smov (!%p87_p2), 8  }
   0xc   : > { %s784_s24 = smov (!%p87_p2), 16   ;;  %s785_s25 = smov (!%p87_p2), 24  }
   0xd   : > { %s907_s7 = smov (!%p104_p3, %s641_s7), 1 }
   0xe   : > { %s646_s8 = sshll.u32 %s907_s7, 3 }
   0xf   : > { %s107_s11 = scalar_lea.vmem %s904_s0, %s646_s8  ;;  %s111_s28 = scalar_lea.vmem %s905_s1, %s646_s8 }
  0x10   : > { %v113_v1 = vld [vmem:[%s107_s11] sm:$0xff] }
  0x11   : > { %v818_v2 = vpack.c.bf16 %v113_v1, %v113_v1 }
  0x13   : > { %121 = vrot.lane.b32.xlu0 %v818_v2, %s772_s12  ;;  %184 = vrot.lane.b32.xlu1 %v818_v2, %s773_s13 }
  0x17   : > { %235 = vrot.lane.b32.xlu1 %v818_v2, %s774_s14 }
  0x85   : > { %v122_v3 = vpop.permute.xlu0 %121  ;;  %v185_v15 = vpop.permute.xlu1 %184 }
  0x86   : > { %v128_v4 = vsel %vm123_vm1, %v122_v3, 0  ;;  %v191_v16 = vsel %vm189_vm3, %v185_v15, 0 }
  0x87   : > { %675 = vmatpush3.bf16.xpose.msra.mxu0 %v128_v4  ;;  %681 = vmatpush3.bf16.msra.mxu1 %v191_v16 }
  0x88   : > { %692 = vmatprep.subr.bf16.mxu0 %v770_v0  ;;  %686 = vmatprep.subr.bf16.mxu1 %v770_v0 }
  0x89   : > { %v236_v22 = vpop.permute.xlu1 %235 }
  0x8a   : > { %v241_v28 = vsel %vm123_vm1, %v236_v22, 0 }
  0x8e   : > { %677 = vmatmul.mubr.msk.bf16.vlgmr.msra.gmra.mrb[0].mxu0 %vm123_vm1, %v818_v2 }
  0x8f   : > { %694 = vmatprep.mubr.msk.bf16.mxu0 %vm771_vm0, %v770_v0 }
 0x161   : > { %v164_v8 = vpop.f32.mrb[0].mxu0 }
 0x162   : > { %v170_v9 = vmul.f32 0.35355338, %v164_v8  ;;  %v678_v10 = vpop.f32.mrb[1].mxu0 }
 0x163   : > { %v167_v11 = vpop.f32.mrb[2].mxu0 }
 0x164   : > { %v679_v12 = vpop.f32.mrb[3].mxu0  ;;  %v171_v13 = vsel %vm118_vm2, %v170_v9, -1e+30 }
 0x165   : > { %v172_v14 = vsel %vm123_vm1, %v171_v13, -inf }
 0x166   : > { %173 = vmax.xlane.f32.xlu0 %v172_v14 }
 0x17c   : > { %459 = vrot.lane.b32.xlu0 %v818_v2, %s775_s15 }
 0x1f3   : > { %v174_v17 = vpop.xlane.xlu0 %173 }
 0x1f4   : > { %v175_v18 = vsub.f32 %v171_v13, %v174_v17 }
 0x1f6   : > { %v176_v19 = vmul.f32 1.442695, %v175_v18 }
 0x1f7   : > { %v460_v31 = vpop.permute.xlu0 %459 }
 0x1f8   : > { %746 = vpow2.f32 %v176_v19  ;;  %v465_v33 = vsel %vm123_vm1, %v460_v31, 0 }
 0x202   : > { %v747_v20 = vpop.eup %746 }
 0x203   : > { %v178_v21 = vsel %vm123_vm1, %v747_v20, 0.0 }
 0x204   : > { %179 = vadd.xlane.f32.xlu1 %v178_v21 }
 0x215   : > { %233 = vrot.lane.b32.xlu1 %v818_v2, %s776_s16 }
 0x219   : > { %347 = vrot.lane.b32.xlu1 %v818_v2, %s777_s17 }
 0x21d   : > { %345 = vrot.lane.b32.xlu1 %v818_v2, %s778_s18 }
 0x221   : > { %457 = vrot.lane.b32.xlu1 %v818_v2, %s779_s19 }
 0x291   : > { %v180_v23 = vpop.xlane.xlu1 %179 }
 0x292   : > { %748 = vrcp.f32 %v180_v23 }
 0x295   : > { %v234_v26 = vpop.permute.xlu1 %233 }
 0x299   : > { %v348_v29 = vpop.permute.xlu1 %347 }
 0x29a   : > { %v353_v30 = vsel %vm123_vm1, %v348_v29, 0 }
 0x29c   : > { %v749_v24 = vpop.eup %748 }
 0x29d   : > { %v182_v25 = vmul.f32 %v749_v24, %v747_v20  ;;  %v346_v32 = vpop.permute.xlu1 %345 }
 0x29f   : > { %v183_v27 = vpack.c.bf16 %v182_v25, %v182_v25 }
 0x2a1   : > { %683 = vmatmul.mubr.msk.bf16.vlgmr.msra.gmra.mrb[0].mxu1 %vm123_vm1, %v183_v27  ;;  %v458_v34 = vpop.permute.xlu1 %457 }
 0x2a2   : > { %687 = vmatpush3.bf16.xpose.msra.mxu1 %v241_v28  ;;  %688 = vmatprep.mubr.msk.bf16.mxu1 %vm771_vm0, %v770_v0 }
 0x2a3   : > { %698 = vmatprep.subr.bf16.mxu1 %v770_v0 }
 0x2a9   : > { %689 = vmatmul.mubr.msk.bf16.vlgmr.msra.gmra.mrb[4].mxu1 %vm123_vm1, %v234_v26 }
 0x2aa   : > { %699 = vmatpush3.bf16.xpose.msra.mxu1 %v353_v30  ;;  %700 = vmatprep.mubr.msk.bf16.mxu1 %vm771_vm0, %v770_v0 }
 0x2ab   : > { %710 = vmatprep.subr.bf16.mxu1 %v770_v0 }
 0x2b1   : > { %701 = vmatmul.mubr.msk.bf16.vlgmr.msra.gmra.mrb[8].mxu1 %vm123_vm1, %v346_v32 }
 0x2b2   : > { %711 = vmatpush3.bf16.xpose.msra.mxu1 %v465_v33  ;;  %712 = vmatprep.mubr.msk.bf16.mxu1 %vm771_vm0, %v770_v0 }
 0x2b9   : > { %713 = vmatmul.mubr.msk.bf16.vlgmr.msra.gmra.mrb[12].mxu1 %vm123_vm1, %v458_v34 }
 0x374   : > { %v862_v35 = vpop.f32.mrb[0].mxu1 }
 0x375   : > { %v684_v36 = vpop.f32.mrb[1].mxu1 }
 0x376   : > { %v230_v37 = vpop.f32.mrb[2].mxu1 }
 0x377   : > { %v685_v38 = vpop.f32.mrb[3].mxu1 }
 0x37c   : > { %v277_v39 = vpop.f32.mrb[4].mxu1 }
 0x37d   : > { %v283_v40 = vmul.f32 0.35355338, %v277_v39  ;;  %v690_v41 = vpop.f32.mrb[5].mxu1 }
 0x37e   : > { %v280_v42 = vpop.f32.mrb[6].mxu1 }
 0x37f   : > { %v691_v43 = vpop.f32.mrb[7].mxu1  ;;  %v284_v44 = vsel %vm118_vm2, %v283_v40, -1e+30 }
 0x380   : > { %v285_v45 = vsel %vm123_vm1, %v284_v44, -inf }
 0x381   : > { %286 = vmax.xlane.f32.xlu1 %v285_v45 }
 0x384   : > { %v389_v46 = vpop.f32.mrb[8].mxu1 }
 0x385   : > { %v395_v47 = vmul.f32 0.35355338, %v389_v46  ;;  %v702_v48 = vpop.f32.mrb[9].mxu1 }
 0x386   : > { %v392_v49 = vpop.f32.mrb[10].mxu1 }
 0x387   : > { %v396_v50 = vsel %vm118_vm2, %v395_v47, -1e+30  ;;  %v703_v51 = vpop.f32.mrb[11].mxu1 }
 0x388   : > { %v397_v52 = vsel %vm123_vm1, %v396_v50, -inf }
 0x389   : > { %398 = vmax.xlane.f32.xlu0 %v397_v52 }
 0x38c   : > { %v501_v53 = vpop.f32.mrb[12].mxu1 }
 0x38d   : > { %v507_v54 = vmul.f32 0.35355338, %v501_v53  ;;  %v714_v55 = vpop.f32.mrb[13].mxu1 }
 0x38e   : > { %v504_v56 = vpop.f32.mrb[14].mxu1 }
 0x38f   : > { %v508_v57 = vsel %vm118_vm2, %v507_v54, -1e+30  ;;  %v715_v58 = vpop.f32.mrb[15].mxu1 }
 0x390   : > { %v509_v59 = vsel %vm123_vm1, %v508_v57, -inf }
 0x391   : > { %510 = vmax.xlane.f32.xlu1 %v509_v59 }
 0x40e   : > { %v287_v60 = vpop.xlane.xlu1 %286 }
 0x40f   : > { %v288_v61 = vsub.f32 %v284_v44, %v287_v60 }
 0x411   : > { %v289_v62 = vmul.f32 1.442695, %v288_v61 }
 0x413   : > { %750 = vpow2.f32 %v289_v62 }
 0x416   : > { %v399_v7 = vpop.xlane.xlu0 %398 }
 0x417   : > { %v400_v9 = vsub.f32 %v396_v50, %v399_v7 }
 0x419   : > { %v401_v10 = vmul.f32 1.442695, %v400_v9 }
 0x41d   : > { %v751_v63 = vpop.eup %750 }
 0x41e   : > { %v511_v1 = vpop.xlane.xlu1 %510  ;;  %v291_v3 = vsel %vm123_vm1, %v751_v63, 0.0 }
 0x41f   : > { %v512_v4 = vsub.f32 %v508_v57, %v511_v1  ;;  %292 = vadd.xlane.f32.xlu1 %v291_v3 }
 0x421   : > { %v513_v5 = vmul.f32 1.442695, %v512_v4 }
 0x423   : > { %752 = vpow2.f32 %v513_v5 }
 0x424   : > { %754 = vpow2.f32 %v401_v10 }
 0x42d   : > { %v753_v8 = vpop.eup %752 }
 0x42e   : > { %v515_v6 = vsel %vm123_vm1, %v753_v8, 0.0  ;;  %v755_v11 = vpop.eup %754 }
 0x42f   : > { %516 = vadd.xlane.f32.xlu0 %v515_v6  ;;  %v403_v12 = vsel %vm123_vm1, %v755_v11, 0.0 }
 0x430   : > { %297 = vrot.lane.b32.xlu1 %v818_v2, %s780_s20 }
 0x445   : > { %409 = vrot.lane.b32.xlu0 %v818_v2, %s781_s21 }
 0x454   : > { %404 = vadd.xlane.f32.xlu1 %v403_v12 }
 0x465   : > { %521 = vrot.lane.b32.xlu1 %v818_v2, %s782_s22 }
 0x4ac   : > { %v293_v13 = vpop.xlane.xlu1 %292 }
 0x4ad   : > { %756 = vrcp.f32 %v293_v13 }
 0x4b0   : > { %v298_v14 = vpop.permute.xlu1 %297 }
 0x4b1   : > { %v303_v15 = vsel %vm189_vm3, %v298_v14, 0 }
 0x4b2   : > { %693 = vmatpush3.bf16.msra.mxu0 %v303_v15 }
 0x4b3   : > { %704 = vmatprep.subr.bf16.mxu0 %v770_v0 }
 0x4b7   : > { %v757_v16 = vpop.eup %756 }
 0x4b8   : > { %v295_v17 = vmul.f32 %v757_v16, %v751_v63 }
 0x4ba   : > { %v296_v18 = vpack.c.bf16 %v295_v17, %v295_v17 }
 0x4bc   : > { %695 = vmatmul.mubr.msk.bf16.vlgmr.msra.gmra.mrb[4].mxu0 %vm123_vm1, %v296_v18  ;;  %v517_v19 = vpop.xlane.xlu0 %516 }
 0x4bd   : > { %706 = vmatprep.mubr.msk.bf16.mxu0 %vm771_vm0, %v770_v0 }
 0x4c0   : > { %v410_v20 = vpop.permute.xlu0 %409 }
 0x4c1   : > { %v415_v2 = vsel %vm189_vm3, %v410_v20, 0 }
 0x4c2   : > { %705 = vmatpush3.bf16.msra.mxu0 %v415_v2 }
 0x4c3   : > { %716 = vmatprep.subr.bf16.mxu0 %v770_v0 }
 0x4e1   : > { %v405_v21 = vpop.xlane.xlu1 %404 }
 0x4e2   : > { %758 = vrcp.f32 %v405_v21 }
 0x4e3   : > { %760 = vrcp.f32 %v517_v19 }
 0x4e5   : > { %v522_v23 = vpop.permute.xlu1 %521 }
 0x4e6   : > { %v527_v25 = vsel %vm189_vm3, %v522_v23, 0 }
 0x4ec   : > { %v759_v22 = vpop.eup %758 }
 0x4ed   : > { %v407_v24 = vmul.f32 %v759_v22, %v755_v11  ;;  %v761_v27 = vpop.eup %760 }
 0x4ee   : > { %v519_v28 = vmul.f32 %v761_v27, %v753_v8 }
 0x4ef   : > { %v408_v26 = vpack.c.bf16 %v407_v24, %v407_v24 }
 0x4f0   : > { %v520_v29 = vpack.c.bf16 %v519_v28, %v519_v28 }
 0x4f1   : > { %707 = vmatmul.mubr.msk.bf16.vlgmr.msra.gmra.mrb[8].mxu0 %vm123_vm1, %v408_v26 }
 0x4f2   : > { %717 = vmatpush3.bf16.msra.mxu0 %v527_v25  ;;  %718 = vmatprep.mubr.msk.bf16.mxu0 %vm771_vm0, %v770_v0 }
 0x4f9   : > { %719 = vmatmul.mubr.msk.bf16.vlgmr.msra.gmra.mrb[12].mxu0 %vm123_vm1, %v520_v29 }
 0x58f   : > { %v339_v30 = vpop.f32.mrb[4].mxu0 }
 0x590   : > { %570 = vrot.lane.b32.xlu1 %v339_v30, %s783_s23  ;;  %v696_v31 = vpop.f32.mrb[5].mxu0 }
 0x591   : > { %v342_v32 = vpop.f32.mrb[6].mxu0 }
 0x592   : > { %v697_v33 = vpop.f32.mrb[7].mxu0 }
 0x5c4   : > { %v451_v34 = vpop.f32.mrb[8].mxu0 }
 0x5c5   : > { %574 = vrot.lane.b32.xlu0 %v451_v34, %s784_s24  ;;  %v708_v36 = vpop.f32.mrb[9].mxu0 }
 0x5c6   : > { %v454_v37 = vpop.f32.mrb[10].mxu0 }
 0x5c7   : > { %v709_v38 = vpop.f32.mrb[11].mxu0 }
 0x5cc   : > { %v563_v39 = vpop.f32.mrb[12].mxu0 }
 0x5cd   : > { %578 = vrot.lane.b32.xlu1 %v563_v39, %s785_s25  ;;  %v720_v0 = vpop.f32.mrb[13].mxu0 }
 0x5ce   : > { %v566_v40 = vpop.f32.mrb[14].mxu0 }
 0x5cf   : > { %v721_v41 = vpop.f32.mrb[15].mxu0 }
 0x602   : > { %v571_v42 = vpop.permute.xlu1 %570 }
 0x603   : > { %v581_v44 = vsel %vm123_vm1, %v862_v35, %v571_v42 }
 0x637   : > { %v575_v43 = vpop.permute.xlu0 %574 }
 0x638   : > { %v583_v45 = vsel %vm582_vm4, %v581_v44, %v575_v43 }
 0x63f   : > { %v579_v46 = vpop.permute.xlu1 %578 }
 0x640   : > { %v585_v47 = vsel %vm584_vm5, %v583_v45, %v579_v46 }
 0x641   : > { %587 = vst.msk [vmem:[%s111_s28] sm:$0xff] %vm586_vm6, %v585_v47 }
 0x642 PF: > { %s11_s6 = sadd.s32 1, %s768_s6  }
 0x643   : > { %p8_p4 = scmp.ge.s32.totalorder %s11_s6, 4  }
 0x645   :  { %10 = sbr.rel (!%p8_p4) target bundleno = 1 (0x1), region = 54 }

// kernel: gpt2_with_future_forward.36
= control target key start
LH: loop header
LB: loop body
LE: loop exit
PB: predicated region body
PF: predicated region fallthrough
CT: control target
= control target key end

     0   :  { %vm16_vm0 = vcmask 261120   ;;  %s118_s0 = inlined_call_operand.vmem [shape: f32[16,32], index: 0, kind: input, shape index: {}]   ;;  %s119_s1 = inlined_call_operand.vmem [shape: f32[1,32], index: 1, kind: input, shape index: {}]   ;;  %s120_s2 = inlined_call_operand.vmem [shape: f32[1,32], index: 2, kind: input, shape index: {}]   ;;  %s121_s3 = inlined_call_operand.vmem [shape: f32[16,32], index: 3, kind: output, shape index: {}]  }
   0x1   :  { %v14_v0 = vld [vmem:[%s118_s0] sm:$0xff]  ;;  %v15_v1 = vld [vmem:[%s118_s0 + $0x8] sm:$0xff] }
   0x2   :  { %v17_v2 = vsel %vm16_vm0, %v14_v0, 0.0  ;;  %v20_v3 = vsel %vm16_vm0, %v15_v1, 0.0  ;;  %v68_v21 = vld [vmem:[%s119_s1] ss:$0 sm:$0xff] }
   0x3   :  { %18 = vadd.xlane.f32.xlu0 %v17_v2  ;;  %v69_v23 = vld [vmem:[%s120_s2] ss:$0 sm:$0xff] }
   0x7   :  { %21 = vadd.xlane.f32.xlu0 %v20_v3 }
  0x90   :  { %v19_v4 = vpop.xlane.xlu0 %18 }
  0x91   :  { %v24_v5 = vmul.f32 0.03125, %v19_v4 }
  0x93   :  { %v26_v6 = vsub.f32 %v14_v0, %v24_v5 }
  0x94   :  { %v22_v7 = vpop.xlane.xlu0 %21 }
  0x95   :  { %v25_v8 = vmul.f32 0.03125, %v22_v7  ;;  %v28_v9 = vmul.f32 %v26_v6, %v26_v6 }
  0x97   :  { %v27_v10 = vsub.f32 %v15_v1, %v25_v8  ;;  %v30_v11 = vsel %vm16_vm0, %v28_v9, 0.0 }
  0x98   :  { %31 = vadd.xlane.f32.xlu1 %v30_v11 }
  0x99   :  { %v29_v12 = vmul.f32 %v27_v10, %v27_v10 }
  0x9b   :  { %v33_v13 = vsel %vm16_vm0, %v29_v12, 0.0 }
  0x9c   :  { %34 = vadd.xlane.f32.xlu1 %v33_v13 }
 0x125   :  { %v32_v14 = vpop.xlane.xlu1 %31 }
 0x126   :  { %v36_v15 = vmul.f32 0.03125, %v32_v14 }
 0x128   :  { %v38_v16 = vadd.f32 1e-05, %v36_v15 }
 0x129   :  { %v35_v17 = vpop.xlane.xlu1 %34 }
 0x12a   :  { %70 = vrsqrt.f32 %v38_v16  ;;  %v37_v18 = vmul.f32 0.03125, %v35_v17 }
 0x12c   :  { %v39_v19 = vadd.f32 1e-05, %v37_v18 }
 0x12e   :  { %72 = vrsqrt.f32 %v39_v19 }
 0x134   :  { %v71_v20 = vpop.eup %70 }
 0x135   :  { %v42_v22 = vmul.f32 %v71_v20, %v26_v6 }
 0x137   :  { %v51_v24 = vmul.f32 %v68_v21, %v42_v22 }
 0x138   :  { %v73_v25 = vpop.eup %72 }
 0x139   :  { %v60_v26 = vadd.f32 %v69_v23, %v51_v24  ;;  %v43_v27 = vmul.f32 %v73_v25, %v27_v10 }
 0x13b   :  { %62 = vst.msk [vmem:[%s121_s3] sm:$0xff] %vm16_vm0, %v60_v26  ;;  %v52_v28 = vmul.f32 %v68_v21, %v43_v27 }
 0x13d   :  { %v61_v29 = vadd.f32 %v69_v23, %v52_v28 }
 0x13f   :  { %63 = vst.msk [vmem:[%s121_s3 + $0x8] sm:$0xff] %vm16_vm0, %v61_v29 }

// kernel: gpt2_with_future_forward.30
= control target key start
LH: loop header
LB: loop body
LE: loop exit
PB: predicated region body
PF: predicated region fallthrough
CT: control target
= control target key end

     0   :  { %vm22_vm0 = vcmask 261120   ;;  %v156_v0 = vmov 0.0   ;;  %vm157_vm1 = vmmov 0   ;;  %s258_s1 = inlined_call_operand.vmem [shape: f32[128,32], index: 1, kind: input, shape index: {}]   ;;  %s259_s0 = inlined_call_operand.vmem [shape: f32[16,128], index: 0, kind: input, shape index: {}]   ;;  %s260_s2 = inlined_call_operand.vmem [shape: f32[1,32], index: 2, kind: input, shape index: {}]   ;;  %s261_s3 = inlined_call_operand.vmem [shape: f32[16,32], index: 3, kind: input, shape index: {}]   ;;  %s262_s4 = inlined_call_operand.vmem [shape: f32[16,32], index: 4, kind: output, shape index: {}]  }
   0x1   :  { %134 = vmatprep.subr.bf16.mxu0 %v156_v0  ;;  %v30_v1 = vld [vmem:[%s258_s1] sm:$0xff]  ;;  %v31_v2 = vld [vmem:[%s258_s1 + $0x8] sm:$0xff]  ;;  %v32_v3 = vld [vmem:[%s258_s1 + $0x10] sm:$0xff]  ;;  %150 = vmatprep.mubr.msk.bf16.mxu0 %vm157_vm1, %v156_v0  ;;  %23 = vst.msk [vmem:[#allocation2] sm:$0xff] %vm22_vm0, %v156_v0 }
   0x2   :  { %24 = vst.msk [vmem:[#allocation2 + $0x8] sm:$0xff] %vm22_vm0, %v156_v0  ;;  %v46_v4 = vpack.c.bf16 %v31_v2, %v30_v1  ;;  %v33_v5 = vld [vmem:[%s258_s1 + $0x18] sm:$0xff]  ;;  %v34_v7 = vld [vmem:[%s258_s1 + $0x20] sm:$0xff]  ;;  %v35_v8 = vld [vmem:[%s258_s1 + $0x28] sm:$0xff] }
   0x3   :  { %v47_v6 = vpack.c.bf16 %v33_v5, %v32_v3  ;;  %v48_v9 = vpack.c.bf16 %v35_v8, %v34_v7  ;;  %v36_v10 = vld [vmem:[%s258_s1 + $0x30] sm:$0xff]  ;;  %v37_v11 = vld [vmem:[%s258_s1 + $0x38] sm:$0xff]  ;;  %v38_v13 = vld [vmem:[%s258_s1 + $0x40] sm:$0xff] }
   0x4   :  { %135 = vmatpush3.bf16.msra.mxu0 %v46_v4  ;;  %v49_v12 = vpack.c.bf16 %v37_v11, %v36_v10  ;;  %v39_v14 = vld [vmem:[%s258_s1 + $0x48] sm:$0xff]  ;;  %v40_v16 = vld [vmem:[%s258_s1 + $0x50] sm:$0xff]  ;;  %v41_v17 = vld [vmem:[%s258_s1 + $0x58] sm:$0xff] }
   0x5   :  { %136 = vmatprep.subr.bf16.mxu0 %v156_v0  ;;  %v50_v15 = vpack.c.bf16 %v39_v14, %v38_v13  ;;  %v51_v18 = vpack.c.bf16 %v41_v17, %v40_v16  ;;  %v42_v19 = vld [vmem:[%s258_s1 + $0x60] sm:$0xff]  ;;  %v43_v20 = vld [vmem:[%s258_s1 + $0x68] sm:$0xff]  ;;  %v44_v22 = vld [vmem:[%s258_s1 + $0x70] sm:$0xff] }
   0x6   :  { %v52_v21 = vpack.c.bf16 %v43_v20, %v42_v19  ;;  %v45_v23 = vld [vmem:[%s258_s1 + $0x78] sm:$0xff]  ;;  %v27_v25 = vld [vmem:[%s259_s0] sm:$0xff]  ;;  %v28_v26 = vld [vmem:[%s259_s0 + $0x8] sm:$0xff] }
   0x7   :  { %v53_v24 = vpack.c.bf16 %v45_v23, %v44_v22  ;;  %v29_v27 = vpack.c.bf16 %v28_v26, %v27_v25  ;;  %v124_v36 = vld [vmem:[%s260_s2] ss:$0 sm:$0xff]  ;;  %v115_v40 = vld [vmem:[%s261_s3 + $0x8] sm:$0xff] }
   0x8   :  { %137 = vmatpush3.bf16.msra.mxu0 %v47_v6  ;;  %v25_v28 = vld [vmem:[#allocation2] sm:$0xff] }
   0x9   :  { %138 = vmatprep.subr.bf16.mxu0 %v156_v0  ;;  %v26_v30 = vld [vmem:[#allocation2 + $0x8] sm:$0xff]  ;;  %v114_v38 = vld [vmem:[%s261_s3] sm:$0xff] }
   0xc   :  { %139 = vmatpush3.bf16.msra.mxu0 %v48_v9 }
   0xd   :  { %140 = vmatprep.subr.bf16.mxu0 %v156_v0 }
  0x10   :  { %141 = vmatpush3.bf16.msra.mxu0 %v49_v12 }
  0x11   :  { %142 = vmatprep.subr.bf16.mxu0 %v156_v0 }
  0x14   :  { %143 = vmatpush3.bf16.msra.mxu0 %v50_v15 }
  0x15   :  { %144 = vmatprep.subr.bf16.mxu0 %v156_v0 }
  0x18   :  { %145 = vmatpush3.bf16.msra.mxu0 %v51_v18 }
  0x19   :  { %146 = vmatprep.subr.bf16.mxu0 %v156_v0 }
  0x1c   :  { %147 = vmatpush3.bf16.msra.mxu0 %v52_v21 }
  0x1d   :  { %148 = vmatprep.subr.bf16.mxu0 %v156_v0 }
  0x20   :  { %149 = vmatpush3.bf16.msra.mxu0 %v53_v24 }
  0x23   :  { %151 = vmatmul.mubr.bf16.vlgmr.msra.gmra.mrb[0].mxu0 %v29_v27 }
  0xf6   :  { %v88_v29 = vpop.f32.mrb[0].mxu0 }
  0xf7   :  { %v95_v31 = vadd.f32 %v88_v29, %v25_v28  ;;  %v152_v32 = vpop.f32.mrb[1].mxu0 }
  0xf8   :  { %v91_v33 = vpop.f32.mrb[2].mxu0 }
  0xf9   :  { %98 = vst.msk [vmem:[#allocation2] sm:$0xff] %vm22_vm0, %v95_v31  ;;  %v96_v34 = vadd.f32 %v91_v33, %v26_v30  ;;  %v153_v35 = vpop.f32.mrb[3].mxu0 }
  0xfb   :  { %99 = vst.msk [vmem:[#allocation2 + $0x8] sm:$0xff] %vm22_vm0, %v96_v34 }
 0x100   :  { %v103_v37 = vld [vmem:[#allocation2] sm:$0xff] }
 0x101   :  { %v112_v39 = vadd.f32 %v124_v36, %v103_v37 }
 0x102   :  { %v104_v41 = vld [vmem:[#allocation2 + $0x8] sm:$0xff] }
 0x103   :  { %v116_v42 = vadd.f32 %v114_v38, %v112_v39  ;;  %v113_v43 = vadd.f32 %v124_v36, %v104_v41 }
 0x105   :  { %118 = vst.msk [vmem:[%s262_s4] sm:$0xff] %vm22_vm0, %v116_v42  ;;  %v117_v44 = vadd.f32 %v115_v40, %v113_v43 }
 0x107   :  { %119 = vst.msk [vmem:[%s262_s4 + $0x8] sm:$0xff] %vm22_vm0, %v117_v44 }

// kernel: gpt2_with_future_forward.37
= control target key start
LH: loop header
LB: loop body
LE: loop exit
PB: predicated region body
PF: predicated region fallthrough
CT: control target
= control target key end

     0   :  { %vm19_vm0 = vcmask 785408   ;;  %v118_v0 = vmov 0.0   ;;  %vm119_vm1 = vmmov 0   ;;  %vm33_vm2 = vcmask 261120   ;;  %s173_s1 = inlined_call_operand.vmem [shape: f32[32,96], index: 1, kind: input, shape index: {}]   ;;  %s174_s0 = inlined_call_operand.vmem [shape: f32[16,32], index: 0, kind: input, shape index: {}]   ;;  %s175_s2 = inlined_call_operand.vmem [shape: f32[1,96], index: 2, kind: input, shape index: {}]   ;;  %s176_s3 = inlined_call_operand.vmem [shape: f32[16,96], index: 3, kind: output, shape index: {}]  }
   0x1   :  { %108 = vmatprep.subr.bf16.mxu0 %v118_v0  ;;  %v27_v1 = vld [vmem:[%s173_s1] sm:$0xff]  ;;  %v28_v2 = vld [vmem:[%s173_s1 + $0x8] sm:$0xff]  ;;  %v29_v3 = vld [vmem:[%s173_s1 + $0x10] sm:$0xff]  ;;  %112 = vmatprep.mubr.msk.bf16.mxu0 %vm119_vm1, %v118_v0  ;;  %20 = vst.msk [vmem:[#allocation2] sm:$0xff] %vm19_vm0, %v118_v0 }
   0x2   :  { %21 = vst.msk [vmem:[#allocation2 + $0x8] sm:$0xff] %vm19_vm0, %v118_v0  ;;  %v31_v4 = vpack.c.bf16 %v28_v2, %v27_v1  ;;  %v30_v5 = vld [vmem:[%s173_s1 + $0x18] sm:$0xff]  ;;  %v24_v7 = vld [vmem:[%s174_s0] sm:$0xff]  ;;  %v25_v8 = vld [vmem:[%s174_s0 + $0x8] sm:$0xff] }
   0x3   :  { %v32_v6 = vpack.c.bf16 %v30_v5, %v29_v3  ;;  %v26_v9 = vpack.c.bf16 %v25_v8, %v24_v7  ;;  %v104_v18 = vld [vmem:[%s175_s2] ss:$0 sm:$0xff] }
   0x4   :  { %109 = vmatpush3.bf16.msra.mxu0 %v31_v4 }
   0x5   :  { %110 = vmatprep.subr.bf16.mxu0 %v118_v0 }
   0x8   :  { %111 = vmatpush3.bf16.msra.mxu0 %v32_v6  ;;  %v22_v10 = vld [vmem:[#allocation2] sm:$0xff] }
   0x9   :  { %v23_v12 = vld [vmem:[#allocation2 + $0x8] sm:$0xff] }
   0xb   :  { %113 = vmatmul.mubr.msk.bf16.vlgmr.msra.gmra.mrb[0].mxu0 %vm33_vm2, %v26_v9 }
  0xde   :  { %v71_v11 = vpop.f32.mrb[0].mxu0 }
  0xdf   :  { %v78_v13 = vadd.f32 %v71_v11, %v22_v10  ;;  %v114_v14 = vpop.f32.mrb[1].mxu0 }
  0xe0   :  { %v74_v15 = vpop.f32.mrb[2].mxu0 }
  0xe1   :  { %81 = vst.msk [vmem:[#allocation2] sm:$0xff] %vm19_vm0, %v78_v13  ;;  %v79_v16 = vadd.f32 %v74_v15, %v23_v12  ;;  %v115_v17 = vpop.f32.mrb[3].mxu0 }
  0xe3   :  { %82 = vst.msk [vmem:[#allocation2 + $0x8] sm:$0xff] %vm19_vm0, %v79_v16 }
  0xe8   :  { %v86_v19 = vld [vmem:[#allocation2] sm:$0xff] }
  0xe9   :  { %v95_v20 = vadd.f32 %v104_v18, %v86_v19 }
  0xea   :  { %v87_v21 = vld [vmem:[#allocation2 + $0x8] sm:$0xff] }
  0xeb   :  { %97 = vst.msk [vmem:[%s176_s3] sm:$0xff] %vm19_vm0, %v95_v20  ;;  %v96_v22 = vadd.f32 %v104_v18, %v87_v21 }
  0xed   :  { %98 = vst.msk [vmem:[%s176_s3 + $0x8] sm:$0xff] %vm19_vm0, %v96_v22 }

// kernel: gpt2_with_future_forward.38
= control target key start
LH: loop header
LB: loop body
LE: loop exit
PB: predicated region body
PF: predicated region fallthrough
CT: control target
= control target key end

     0   :  { %s789_s6 = smov 0   ;;  %s879_s0 = inlined_call_operand.vmem [shape: f32[8,2,96], index: 0, kind: input, shape index: {}]   ;;  %s880_s1 = inlined_call_operand.vmem [shape: f32[8,2,32], index: 1, kind: output, shape index: {}]  }
   0x1 LB: > { %s634_s7 = sadd.s32 4294967295, %s761_s6   ;;  %p638_p0 = scmp.ge.s32.totalorder %s761_s6, 1  ;;  %s761_s6 = sphi %s789_s6, %s11_s6  }
   0x2   : > { %p86_p1 = scmp.lt.s32.totalorder %s761_s6, 9 }
   0x4   : > { %p87_p2 = pnand %p638_p0, %p86_p1 }
   0x5   : > { %p104_p3 = scmp.lt.s32.totalorder (!%p87_p2), %s634_s7, 7  ;;  %v763_v0 = vmov (!%p87_p2), 0.0   ;;  %vm764_vm0 = vmmov (!%p87_p2), 0   ;;  %s765_s12 = smov (!%p87_p2), 96   ;;  %vm118_vm1 = vcmask (!%p87_p2), 64512   ;;  %vm166_vm2 = vcmask (!%p87_p2), 9216  }
   0x6   : > { %90 = sbr.rel (%p87_p2) target bundleno = 1600 (0x640), region = 24  ;;  %667 = vmatprep.subr.bf16.mxu0 (!%p87_p2), %v763_v0  ;;  %669 = vmatprep.mubr.msk.bf16.mxu0 (!%p87_p2), %vm764_vm0, %v763_v0  ;;  %s766_s13 = smov (!%p87_p2), 64   ;;  %vm185_vm3 = vcmask (!%p87_p2), 1040384   ;;  %vm181_vm4 = vcmask (!%p87_p2), 15360   ;;  %vm575_vm5 = vcmask (!%p87_p2), 130048   ;;  %vm577_vm6 = vcmask (!%p87_p2), 195584  }
   0x7   : > { %673 = vmatprep.subr.bf16.mxu1 (!%p87_p2), %v763_v0  ;;  %675 = vmatprep.mubr.msk.bf16.mxu1 (!%p87_p2), %vm764_vm0, %v763_v0  ;;  %s767_s14 = smov (!%p87_p2), 88   ;;  %s768_s15 = smov (!%p87_p2), 72   ;;  %vm579_vm7 = vcmask (!%p87_p2), 254976  }
   0x8   : > { %s769_s16 = smov (!%p87_p2), 120   ;;  %s770_s17 = smov (!%p87_p2), 80  }
   0x9   : > { %s771_s18 = smov (!%p87_p2), 112   ;;  %s772_s19 = smov (!%p87_p2), 104  }
   0xa   : > { %s773_s20 = smov (!%p87_p2), 56   ;;  %s774_s21 = smov (!%p87_p2), 48  }
   0xb   : > { %s775_s22 = smov (!%p87_p2), 40   ;;  %s776_s23 = smov (!%p87_p2), 8  }
   0xc   : > { %s777_s24 = smov (!%p87_p2), 16   ;;  %s778_s25 = smov (!%p87_p2), 24  }
   0xd   : > { %s882_s7 = smov (!%p104_p3, %s634_s7), 7 }
   0xe   : > { %s639_s8 = sshll.u32 %s882_s7, 1 }
   0xf   : > { %s107_s11 = scalar_lea.vmem %s879_s0, %s639_s8  ;;  %s111_s28 = scalar_lea.vmem %s880_s1, %s639_s8 }
  0x10   : > { %v113_v1 = vld [vmem:[%s107_s11] sm:$0x3] }
  0x11   : > { %v811_v2 = vpack.c.bf16 %v113_v1, %v113_v1 }
  0x13   : > { %116 = vrot.lane.b32.xlu0 %v811_v2, %s765_s12  ;;  %179 = vrot.lane.b32.xlu1 %v811_v2, %s766_s13 }
  0x17   : > { %231 = vrot.lane.b32.xlu1 %v811_v2, %s767_s14 }
  0x85   : > { %v117_v3 = vpop.permute.xlu0 %116  ;;  %v180_v11 = vpop.permute.xlu1 %179 }
  0x86   : > { %v123_v4 = vsel %vm118_vm1, %v117_v3, 0  ;;  %v187_v12 = vsel %vm185_vm3, %v180_v11, 0 }
  0x87   : > { %668 = vmatpush3.bf16.xpose.msra.mxu0 %v123_v4  ;;  %674 = vmatpush3.bf16.msra.mxu1 %v187_v12 }
  0x88   : > { %685 = vmatprep.subr.bf16.mxu0 %v763_v0  ;;  %679 = vmatprep.subr.bf16.mxu1 %v763_v0 }
  0x89   : > { %v232_v18 = vpop.permute.xlu1 %231 }
  0x8a   : > { %v237_v24 = vsel %vm118_vm1, %v232_v18, 0 }
  0x8e   : > { %670 = vmatmul.mubr.msk.bf16.vlgmr.msra.gmra.mrb[0].mxu0 %vm118_vm1, %v811_v2 }
  0x8f   : > { %687 = vmatprep.mubr.msk.bf16.mxu0 %vm764_vm0, %v763_v0 }
 0x161   : > { %v159_v5 = vpop.f32.mrb[0].mxu0 }
 0x162   : > { %v165_v6 = vmul.f32 0.35355338, %v159_v5  ;;  %v671_v7 = vpop.f32.mrb[1].mxu0 }
 0x163   : > { %v162_v8 = vpop.f32.mrb[2].mxu0 }
 0x164   : > { %v672_v9 = vpop.f32.mrb[3].mxu0  ;;  %v167_v10 = vsel %vm166_vm2, %v165_v6, -inf }
 0x165   : > { %168 = vmax.xlane.f32.xlu0 %v167_v10 }
 0x17b   : > { %453 = vrot.lane.b32.xlu0 %v811_v2, %s768_s15 }
 0x1f2   : > { %v169_v13 = vpop.xlane.xlu0 %168 }
 0x1f3   : > { %v170_v14 = vsub.f32 %v165_v6, %v169_v13 }
 0x1f5   : > { %v171_v15 = vmul.f32 1.442695, %v170_v14 }
 0x1f6   : > { %v454_v27 = vpop.permute.xlu0 %453 }
 0x1f7   : > { %739 = vpow2.f32 %v171_v15  ;;  %v459_v29 = vsel %vm118_vm1, %v454_v27, 0 }
 0x201   : > { %v740_v16 = vpop.eup %739 }
 0x202   : > { %v173_v17 = vsel %vm166_vm2, %v740_v16, 0.0 }
 0x203   : > { %174 = vadd.xlane.f32.xlu1 %v173_v17 }
 0x214   : > { %229 = vrot.lane.b32.xlu1 %v811_v2, %s769_s16 }
 0x218   : > { %342 = vrot.lane.b32.xlu1 %v811_v2, %s770_s17 }
 0x21c   : > { %340 = vrot.lane.b32.xlu1 %v811_v2, %s771_s18 }
 0x220   : > { %451 = vrot.lane.b32.xlu1 %v811_v2, %s772_s19 }
 0x290   : > { %v175_v19 = vpop.xlane.xlu1 %174 }
 0x291   : > { %741 = vrcp.f32 %v175_v19 }
 0x294   : > { %v230_v22 = vpop.permute.xlu1 %229 }
 0x298   : > { %v343_v25 = vpop.permute.xlu1 %342 }
 0x299   : > { %v348_v26 = vsel %vm118_vm1, %v343_v25, 0 }
 0x29b   : > { %v742_v20 = vpop.eup %741 }
 0x29c   : > { %v177_v21 = vmul.f32 %v742_v20, %v740_v16  ;;  %v341_v28 = vpop.permute.xlu1 %340 }
 0x29e   : > { %v178_v23 = vpack.c.bf16 %v177_v21, %v177_v21 }
 0x2a0   : > { %676 = vmatmul.mubr.msk.bf16.vlgmr.msra.gmra.mrb[0].mxu1 %vm181_vm4, %v178_v23  ;;  %v452_v30 = vpop.permute.xlu1 %451 }
 0x2a1   : > { %680 = vmatpush3.bf16.xpose.msra.mxu1 %v237_v24  ;;  %681 = vmatprep.mubr.msk.bf16.mxu1 %vm764_vm0, %v763_v0 }
 0x2a2   : > { %691 = vmatprep.subr.bf16.mxu1 %v763_v0 }
 0x2a8   : > { %682 = vmatmul.mubr.msk.bf16.vlgmr.msra.gmra.mrb[4].mxu1 %vm118_vm1, %v230_v22 }
 0x2a9   : > { %692 = vmatpush3.bf16.xpose.msra.mxu1 %v348_v26  ;;  %693 = vmatprep.mubr.msk.bf16.mxu1 %vm764_vm0, %v763_v0 }
 0x2aa   : > { %703 = vmatprep.subr.bf16.mxu1 %v763_v0 }
 0x2b0   : > { %694 = vmatmul.mubr.msk.bf16.vlgmr.msra.gmra.mrb[8].mxu1 %vm118_vm1, %v341_v28 }
 0x2b1   : > { %704 = vmatpush3.bf16.xpose.msra.mxu1 %v459_v29  ;;  %705 = vmatprep.mubr.msk.bf16.mxu1 %vm764_vm0, %v763_v0 }
 0x2b8   : > { %706 = vmatmul.mubr.msk.bf16.vlgmr.msra.gmra.mrb[12].mxu1 %vm118_vm1, %v452_v30 }
 0x373   : > { %v846_v31 = vpop.f32.mrb[0].mxu1 }
 0x374   : > { %v677_v32 = vpop.f32.mrb[1].mxu1 }
 0x375   : > { %v226_v33 = vpop.f32.mrb[2].mxu1 }
 0x376   : > { %v678_v34 = vpop.f32.mrb[3].mxu1 }
 0x37b   : > { %v273_v35 = vpop.f32.mrb[4].mxu1 }
 0x37c   : > { %v279_v36 = vmul.f32 0.35355338, %v273_v35  ;;  %v683_v37 = vpop.f32.mrb[5].mxu1 }
 0x37d   : > { %v276_v38 = vpop.f32.mrb[6].mxu1 }
 0x37e   : > { %v684_v39 = vpop.f32.mrb[7].mxu1  ;;  %v280_v40 = vsel %vm166_vm2, %v279_v36, -inf }
 0x37f   : > { %281 = vmax.xlane.f32.xlu1 %v280_v40 }
 0x383   : > { %v384_v41 = vpop.f32.mrb[8].mxu1 }
 0x384   : > { %v390_v42 = vmul.f32 0.35355338, %v384_v41  ;;  %v695_v43 = vpop.f32.mrb[9].mxu1 }
 0x385   : > { %v387_v44 = vpop.f32.mrb[10].mxu1 }
 0x386   : > { %v391_v45 = vsel %vm166_vm2, %v390_v42, -inf  ;;  %v696_v46 = vpop.f32.mrb[11].mxu1 }
 0x387   : > { %392 = vmax.xlane.f32.xlu0 %v391_v45 }
 0x38b   : > { %v495_v47 = vpop.f32.mrb[12].mxu1 }
 0x38c   : > { %v501_v48 = vmul.f32 0.35355338, %v495_v47  ;;  %v707_v49 = vpop.f32.mrb[13].mxu1 }
 0x38d   : > { %v498_v50 = vpop.f32.mrb[14].mxu1 }
 0x38e   : > { %v502_v51 = vsel %vm166_vm2, %v501_v48, -inf  ;;  %v708_v52 = vpop.f32.mrb[15].mxu1 }
 0x38f   : > { %503 = vmax.xlane.f32.xlu1 %v502_v51 }
 0x40c   : > { %v282_v53 = vpop.xlane.xlu1 %281 }
 0x40d   : > { %v283_v54 = vsub.f32 %v279_v36, %v282_v53 }
 0x40f   : > { %v284_v55 = vmul.f32 1.442695, %v283_v54 }
 0x411   : > { %743 = vpow2.f32 %v284_v55 }
 0x414   : > { %v393_v63 = vpop.xlane.xlu0 %392 }
 0x415   : > { %v394_v1 = vsub.f32 %v390_v42, %v393_v63 }
 0x417   : > { %v395_v3 = vmul.f32 1.442695, %v394_v1 }
 0x41b   : > { %v744_v56 = vpop.eup %743 }
 0x41c   : > { %v504_v57 = vpop.xlane.xlu1 %503  ;;  %v286_v58 = vsel %vm166_vm2, %v744_v56, 0.0 }
 0x41d   : > { %v505_v59 = vsub.f32 %v501_v48, %v504_v57  ;;  %287 = vadd.xlane.f32.xlu1 %v286_v58 }
 0x41f   : > { %v506_v60 = vmul.f32 1.442695, %v505_v59 }
 0x421   : > { %745 = vpow2.f32 %v506_v60 }
 0x422   : > { %747 = vpow2.f32 %v395_v3 }
 0x42b   : > { %v746_v61 = vpop.eup %745 }
 0x42c   : > { %v508_v62 = vsel %vm166_vm2, %v746_v61, 0.0  ;;  %v748_v4 = vpop.eup %747 }
 0x42d   : > { %509 = vadd.xlane.f32.xlu0 %v508_v62  ;;  %v397_v5 = vsel %vm166_vm2, %v748_v4, 0.0 }
 0x42e   : > { %292 = vrot.lane.b32.xlu1 %v811_v2, %s773_s20 }
 0x443   : > { %403 = vrot.lane.b32.xlu0 %v811_v2, %s774_s21 }
 0x452   : > { %398 = vadd.xlane.f32.xlu1 %v397_v5 }
 0x463   : > { %514 = vrot.lane.b32.xlu1 %v811_v2, %s775_s22 }
 0x4aa   : > { %v288_v6 = vpop.xlane.xlu1 %287 }
 0x4ab   : > { %749 = vrcp.f32 %v288_v6 }
 0x4ae   : > { %v293_v7 = vpop.permute.xlu1 %292 }
 0x4af   : > { %v298_v8 = vsel %vm185_vm3, %v293_v7, 0 }
 0x4b0   : > { %686 = vmatpush3.bf16.msra.mxu0 %v298_v8 }
 0x4b1   : > { %697 = vmatprep.subr.bf16.mxu0 %v763_v0 }
 0x4b5   : > { %v750_v9 = vpop.eup %749 }
 0x4b6   : > { %v290_v10 = vmul.f32 %v750_v9, %v744_v56 }
 0x4b8   : > { %v291_v11 = vpack.c.bf16 %v290_v10, %v290_v10 }
 0x4ba   : > { %688 = vmatmul.mubr.msk.bf16.vlgmr.msra.gmra.mrb[4].mxu0 %vm181_vm4, %v291_v11  ;;  %v510_v12 = vpop.xlane.xlu0 %509 }
 0x4bb   : > { %699 = vmatprep.mubr.msk.bf16.mxu0 %vm764_vm0, %v763_v0 }
 0x4be   : > { %v404_v13 = vpop.permute.xlu0 %403 }
 0x4bf   : > { %v409_v2 = vsel %vm185_vm3, %v404_v13, 0 }
 0x4c0   : > { %698 = vmatpush3.bf16.msra.mxu0 %v409_v2 }
 0x4c1   : > { %709 = vmatprep.subr.bf16.mxu0 %v763_v0 }
 0x4df   : > { %v399_v14 = vpop.xlane.xlu1 %398 }
 0x4e0   : > { %751 = vrcp.f32 %v399_v14 }
 0x4e1   : > { %753 = vrcp.f32 %v510_v12 }
 0x4e3   : > { %v515_v16 = vpop.permute.xlu1 %514 }
 0x4e4   : > { %v520_v18 = vsel %vm185_vm3, %v515_v16, 0 }
 0x4ea   : > { %v752_v15 = vpop.eup %751 }
 0x4eb   : > { %v401_v17 = vmul.f32 %v752_v15, %v748_v4  ;;  %v754_v20 = vpop.eup %753 }
 0x4ec   : > { %v512_v21 = vmul.f32 %v754_v20, %v746_v61 }
 0x4ed   : > { %v402_v19 = vpack.c.bf16 %v401_v17, %v401_v17 }
 0x4ee   : > { %v513_v22 = vpack.c.bf16 %v512_v21, %v512_v21 }
 0x4ef   : > { %700 = vmatmul.mubr.msk.bf16.vlgmr.msra.gmra.mrb[8].mxu0 %vm181_vm4, %v402_v19 }
 0x4f0   : > { %710 = vmatpush3.bf16.msra.mxu0 %v520_v18  ;;  %711 = vmatprep.mubr.msk.bf16.mxu0 %vm764_vm0, %v763_v0 }
 0x4f7   : > { %712 = vmatmul.mubr.msk.bf16.vlgmr.msra.gmra.mrb[12].mxu0 %vm181_vm4, %v513_v22 }
 0x58d   : > { %v334_v23 = vpop.f32.mrb[4].mxu0 }
 0x58e   : > { %563 = vrot.lane.b32.xlu1 %v334_v23, %s776_s23  ;;  %v689_v24 = vpop.f32.mrb[5].mxu0 }
 0x58f   : > { %v337_v25 = vpop.f32.mrb[6].mxu0 }
 0x590   : > { %v690_v26 = vpop.f32.mrb[7].mxu0 }
 0x5c2   : > { %v445_v27 = vpop.f32.mrb[8].mxu0 }
 0x5c3   : > { %567 = vrot.lane.b32.xlu0 %v445_v27, %s777_s24  ;;  %v701_v28 = vpop.f32.mrb[9].mxu0 }
 0x5c4   : > { %v448_v29 = vpop.f32.mrb[10].mxu0 }
 0x5c5   : > { %v702_v30 = vpop.f32.mrb[11].mxu0 }
 0x5ca   : > { %v556_v32 = vpop.f32.mrb[12].mxu0 }
 0x5cb   : > { %571 = vrot.lane.b32.xlu1 %v556_v32, %s778_s25  ;;  %v713_v0 = vpop.f32.mrb[13].mxu0 }
 0x5cc   : > { %v559_v33 = vpop.f32.mrb[14].mxu0 }
 0x5cd   : > { %v714_v34 = vpop.f32.mrb[15].mxu0 }
 0x600   : > { %v564_v35 = vpop.permute.xlu1 %563 }
 0x601   : > { %v574_v37 = vsel %vm118_vm1, %v846_v31, %v564_v35 }
 0x635   : > { %v568_v36 = vpop.permute.xlu0 %567 }
 0x636   : > { %v576_v38 = vsel %vm575_vm5, %v574_v37, %v568_v36 }
 0x63d   : > { %v572_v39 = vpop.permute.xlu1 %571 }
 0x63e   : > { %v578_v40 = vsel %vm577_vm6, %v576_v38, %v572_v39 }
 0x63f   : > { %580 = vst.msk [vmem:[%s111_s28] sm:$0x3] %vm579_vm7, %v578_v40 }
 0x640 PF: > { %s11_s6 = sadd.s32 1, %s761_s6  }
 0x641   : > { %p8_p4 = scmp.ge.s32.totalorder %s11_s6, 10  }
 0x643   :  { %10 = sbr.rel (!%p8_p4) target bundleno = 1 (0x1), region = 54 }

// kernel: gpt2_with_future_forward.51
= control target key start
LH: loop header
LB: loop body
LE: loop exit
PB: predicated region body
PF: predicated region fallthrough
CT: control target
= control target key end

     0   :  { %vm20_vm0 = vcmask 261120   ;;  %v157_v3 = vmov 0.0   ;;  %vm158_vm1 = vmmov 0   ;;  %s222_s0 = inlined_call_operand.vmem [shape: f32[16,32], index: 0, kind: input, shape index: {}]   ;;  %s223_s1 = inlined_call_operand.vmem [shape: f32[32,32], index: 1, kind: input, shape index: {}]   ;;  %s224_s2 = inlined_call_operand.vmem [shape: f32[1,32], index: 2, kind: input, shape index: {}]   ;;  %s225_s3 = inlined_call_operand.hbm [shape: f32[16,32], index: 3, kind: output, shape index: {}]  }
   0x1   :  { %v28_v0 = vld [vmem:[%s223_s1] sm:$0xff]  ;;  %v29_v1 = vld [vmem:[%s223_s1 + $0x8] sm:$0xff]  ;;  %v30_v2 = vld [vmem:[%s223_s1 + $0x10] sm:$0xff]  ;;  %120 = vmatprep.subr.bf16.mxu0 %v157_v3  ;;  %124 = vmatprep.mubr.msk.bf16.mxu0 %vm158_vm1, %v157_v3  ;;  %21 = vst.msk [vmem:[#allocation2] sm:$0xff] %vm20_vm0, %v157_v3 }
   0x2   :  { %v32_v4 = vpack.c.bf16 %v29_v1, %v28_v0  ;;  %v31_v5 = vld [vmem:[%s223_s1 + $0x18] sm:$0xff]  ;;  %22 = vst.msk [vmem:[#allocation2 + $0x8] sm:$0xff] %vm20_vm0, %v157_v3 }
   0x3   :  { %8 = vsyncpa [#allocation4], 0  ;;  %v33_v6 = vpack.c.bf16 %v31_v5, %v30_v2  ;;  %v25_v7 = vld [vmem:[%s222_s0] sm:$0xff]  ;;  %v26_v8 = vld [vmem:[%s222_s0 + $0x8] sm:$0xff]  ;;  %s159_s0 = smov [#allocation3]  }
   0x4   :  { %121 = vmatpush3.bf16.msra.mxu0 %v32_v4  ;;  %v27_v9 = vpack.c.bf16 %v26_v8, %v25_v7  ;;  %v116_v18 = vld [vmem:[%s224_s2] ss:$0 sm:$0xff]  ;;  %s104_s25 = sshll.u32 %s159_s0, 4  ;;  %s105_s25 = int_to_ptr.vmem [resolvable:$true] %s104_s25 }
   0x5   :  { %122 = vmatprep.subr.bf16.mxu0 %v157_v3  ;;  %s133_s26 = scalar_lea.vmem %s105_s25, 256  ;;  %p138_p1 = scmp.lt.s32.totalorder %s105_s25, %s105_s25 }
   0x6   :  { %p134_p0 = scmp.ne.s32.totalorder %s105_s25, %s133_s26  ;;  %p139_p2 = scmp.lt.s32.totalorder %s133_s26, %s133_s26 }
   0x8   :  { %123 = vmatpush3.bf16.msra.mxu0 %v33_v6  ;;  %v23_v10 = vld [vmem:[#allocation2] sm:$0xff]  ;;  %p140_p3 = por %p139_p2, %p138_p1 }
   0x9   :  { %v24_v12 = vld [vmem:[#allocation2 + $0x8] sm:$0xff] }
   0xa   :  { %p141_p4 = pnand %p140_p3, %p134_p0 }
   0xb   :  { %125 = vmatmul.mubr.msk.bf16.vlgmr.msra.gmra.mrb[0].mxu0 %vm20_vm0, %v27_v9 }
  0xde   :  { %v72_v11 = vpop.f32.mrb[0].mxu0 }
  0xdf   :  { %v79_v13 = vadd.f32 %v72_v11, %v23_v10  ;;  %v126_v14 = vpop.f32.mrb[1].mxu0 }
  0xe0   :  { %v75_v15 = vpop.f32.mrb[2].mxu0 }
  0xe1   :  { %81 = vst.msk [vmem:[#allocation2] sm:$0xff] %vm20_vm0, %v79_v13  ;;  %v80_v16 = vadd.f32 %v75_v15, %v24_v12  ;;  %v127_v17 = vpop.f32.mrb[3].mxu0 }
  0xe3   :  { %82 = vst.msk [vmem:[#allocation2 + $0x8] sm:$0xff] %vm20_vm0, %v80_v16 }
  0xe8   :  { %v86_v19 = vld [vmem:[#allocation2] sm:$0xff] }
  0xe9   :  { %v95_v20 = vadd.f32 %v116_v18, %v86_v19 }
  0xea   :  { %v87_v21 = vld [vmem:[#allocation2 + $0x8] sm:$0xff] }
  0xeb   :  { %v96_v22 = vadd.f32 %v116_v18, %v87_v21  ;;  %97 = vst.msk [vmem:[#allocation3] sm:$0xff] %vm20_vm0, %v95_v20 }
  0xed   :  { %98 = vst.msk [vmem:[#allocation3 + $0x8] sm:$0xff] %vm20_vm0, %v96_v22 }
  0xee   :  { %144 = shalt.err (!%p141_p4)
}
  0xef   :  { %s145_s28 = scalar_lea.hbm %s225_s3, 256 }
  0xf0   :  { %p146_p5 = scmp.ne.s32.totalorder %s225_s3, %s145_s28  ;;  %p149_p6 = scmp.lt.u32.totalorder %s145_s28, %s225_s3 }
  0xf2   :  { %p151_p7 = pnand %p149_p6, %p146_p5 }
  0xf4   :  { %154 = shalt.err (!%p151_p7)
}
  0xf5   :  { %s160_s6 = smov 128   ;;  %s161_s7 = smov 8  }
  0xf6   :  { %110 = dma.vmem_to_hbm [thread:$0]  %s105_s25, 256, %s225_s3, [#allocation4], %s160_s6, %s160_s6, %s161_s7  }
  0xf7   :  { %155 = dma.done.wait [#allocation4], 256  }
  0xf8   :  { %156 = vsyncadd [#allocation4], 4294967040 }
  0xf9   :  { %114 = vsyncpa [#allocation4], 1 }

// kernel: gpt2_with_future_forward.42
= control target key start
LH: loop header
LB: loop body
LE: loop exit
PB: predicated region body
PF: predicated region fallthrough
CT: control target
= control target key end

     0   :  { %vm22_vm0 = vcmask 261120   ;;  %v137_v0 = vmov 0.0   ;;  %vm138_vm1 = vmmov 0   ;;  %vm42_vm2 = vcmask 523264   ;;  %s215_s1 = inlined_call_operand.vmem [shape: f32[64,32], index: 1, kind: input, shape index: {}]   ;;  %s216_s0 = inlined_call_operand.vmem [shape: f32[16,64], index: 0, kind: input, shape index: {}]   ;;  %s217_s2 = inlined_call_operand.vmem [shape: f32[1,32], index: 2, kind: input, shape index: {}]   ;;  %s218_s3 = inlined_call_operand.vmem [shape: f32[16,32], index: 3, kind: input, shape index: {}]   ;;  %s219_s4 = inlined_call_operand.vmem [shape: f32[16,32], index: 4, kind: output, shape index: {}]  }
   0x1   :  { %123 = vmatprep.subr.bf16.mxu0 %v137_v0  ;;  %v30_v1 = vld [vmem:[%s215_s1] sm:$0xff]  ;;  %v31_v2 = vld [vmem:[%s215_s1 + $0x8] sm:$0xff]  ;;  %v32_v3 = vld [vmem:[%s215_s1 + $0x10] sm:$0xff]  ;;  %131 = vmatprep.mubr.msk.bf16.mxu0 %vm138_vm1, %v137_v0  ;;  %23 = vst.msk [vmem:[#allocation2] sm:$0xff] %vm22_vm0, %v137_v0 }
   0x2   :  { %24 = vst.msk [vmem:[#allocation2 + $0x8] sm:$0xff] %vm22_vm0, %v137_v0  ;;  %v38_v4 = vpack.c.bf16 %v31_v2, %v30_v1  ;;  %v33_v5 = vld [vmem:[%s215_s1 + $0x18] sm:$0xff]  ;;  %v34_v7 = vld [vmem:[%s215_s1 + $0x20] sm:$0xff]  ;;  %v35_v8 = vld [vmem:[%s215_s1 + $0x28] sm:$0xff] }
   0x3   :  { %v39_v6 = vpack.c.bf16 %v33_v5, %v32_v3  ;;  %v40_v9 = vpack.c.bf16 %v35_v8, %v34_v7  ;;  %v36_v10 = vld [vmem:[%s215_s1 + $0x30] sm:$0xff]  ;;  %v37_v11 = vld [vmem:[%s215_s1 + $0x38] sm:$0xff]  ;;  %v27_v13 = vld [vmem:[%s216_s0] sm:$0xff] }
   0x4   :  { %124 = vmatpush3.bf16.msra.mxu0 %v38_v4  ;;  %v41_v12 = vpack.c.bf16 %v37_v11, %v36_v10  ;;  %v28_v14 = vld [vmem:[%s216_s0 + $0x8] sm:$0xff]  ;;  %v117_v24 = vld [vmem:[%s217_s2] ss:$0 sm:$0xff] }
   0x5   :  { %125 = vmatprep.subr.bf16.mxu0 %v137_v0  ;;  %v29_v15 = vpack.c.bf16 %v28_v14, %v27_v13  ;;  %v106_v26 = vld [vmem:[%s218_s3] sm:$0xff]  ;;  %v107_v28 = vld [vmem:[%s218_s3 + $0x8] sm:$0xff] }
   0x8   :  { %126 = vmatpush3.bf16.msra.mxu0 %v39_v6  ;;  %v25_v16 = vld [vmem:[#allocation2] sm:$0xff] }
   0x9   :  { %127 = vmatprep.subr.bf16.mxu0 %v137_v0  ;;  %v26_v18 = vld [vmem:[#allocation2 + $0x8] sm:$0xff] }
   0xc   :  { %128 = vmatpush3.bf16.msra.mxu0 %v40_v9 }
   0xd   :  { %129 = vmatprep.subr.bf16.mxu0 %v137_v0 }
  0x10   :  { %130 = vmatpush3.bf16.msra.mxu0 %v41_v12 }
  0x13   :  { %132 = vmatmul.mubr.msk.bf16.vlgmr.msra.gmra.mrb[0].mxu0 %vm42_vm2, %v29_v15 }
  0xe6   :  { %v80_v17 = vpop.f32.mrb[0].mxu0 }
  0xe7   :  { %v87_v19 = vadd.f32 %v80_v17, %v25_v16  ;;  %v133_v20 = vpop.f32.mrb[1].mxu0 }
  0xe8   :  { %v83_v21 = vpop.f32.mrb[2].mxu0 }
  0xe9   :  { %90 = vst.msk [vmem:[#allocation2] sm:$0xff] %vm22_vm0, %v87_v19  ;;  %v88_v22 = vadd.f32 %v83_v21, %v26_v18  ;;  %v134_v23 = vpop.f32.mrb[3].mxu0 }
  0xeb   :  { %91 = vst.msk [vmem:[#allocation2 + $0x8] sm:$0xff] %vm22_vm0, %v88_v22 }
  0xf0   :  { %v95_v25 = vld [vmem:[#allocation2] sm:$0xff] }
  0xf1   :  { %v104_v27 = vadd.f32 %v117_v24, %v95_v25 }
  0xf2   :  { %v96_v29 = vld [vmem:[#allocation2 + $0x8] sm:$0xff] }
  0xf3   :  { %v108_v30 = vadd.f32 %v106_v26, %v104_v27  ;;  %v105_v31 = vadd.f32 %v117_v24, %v96_v29 }
  0xf5   :  { %110 = vst.msk [vmem:[%s219_s4] sm:$0xff] %vm22_vm0, %v108_v30  ;;  %v109_v32 = vadd.f32 %v107_v28, %v105_v31 }
  0xf7   :  { %111 = vst.msk [vmem:[%s219_s4 + $0x8] sm:$0xff] %vm22_vm0, %v109_v32 }

// kernel: gpt2_with_future_forward.41
= control target key start
LH: loop header
LB: loop body
LE: loop exit
PB: predicated region body
PF: predicated region fallthrough
CT: control target
= control target key end

     0   :  { %vm19_vm0 = vcmask 523264   ;;  %v120_v0 = vmov 0.0   ;;  %vm121_vm1 = vmmov 0   ;;  %vm33_vm2 = vcmask 261120   ;;  %s175_s1 = inlined_call_operand.vmem [shape: f32[32,64], index: 1, kind: input, shape index: {}]   ;;  %s176_s0 = inlined_call_operand.vmem [shape: f32[16,32], index: 0, kind: input, shape index: {}]   ;;  %s177_s2 = inlined_call_operand.vmem [shape: f32[1,64], index: 2, kind: input, shape index: {}]   ;;  %s178_s3 = inlined_call_operand.vmem [shape: f32[16,64], index: 3, kind: output, shape index: {}]  }
   0x1   :  { %110 = vmatprep.subr.bf16.mxu0 %v120_v0  ;;  %v27_v1 = vld [vmem:[%s175_s1] sm:$0xff]  ;;  %v28_v2 = vld [vmem:[%s175_s1 + $0x8] sm:$0xff]  ;;  %v29_v3 = vld [vmem:[%s175_s1 + $0x10] sm:$0xff]  ;;  %114 = vmatprep.mubr.msk.bf16.mxu0 %vm121_vm1, %v120_v0  ;;  %20 = vst.msk [vmem:[#allocation2] sm:$0xff] %vm19_vm0, %v120_v0 }
   0x2   :  { %21 = vst.msk [vmem:[#allocation2 + $0x8] sm:$0xff] %vm19_vm0, %v120_v0  ;;  %v31_v4 = vpack.c.bf16 %v28_v2, %v27_v1  ;;  %v30_v5 = vld [vmem:[%s175_s1 + $0x18] sm:$0xff]  ;;  %v24_v7 = vld [vmem:[%s176_s0] sm:$0xff]  ;;  %v25_v8 = vld [vmem:[%s176_s0 + $0x8] sm:$0xff] }
   0x3   :  { %v32_v6 = vpack.c.bf16 %v30_v5, %v29_v3  ;;  %v26_v9 = vpack.c.bf16 %v25_v8, %v24_v7  ;;  %v106_v18 = vld [vmem:[%s177_s2] ss:$0 sm:$0xff] }
   0x4   :  { %111 = vmatpush3.bf16.msra.mxu0 %v31_v4 }
   0x5   :  { %112 = vmatprep.subr.bf16.mxu0 %v120_v0 }
   0x8   :  { %113 = vmatpush3.bf16.msra.mxu0 %v32_v6  ;;  %v22_v10 = vld [vmem:[#allocation2] sm:$0xff] }
   0x9   :  { %v23_v12 = vld [vmem:[#allocation2 + $0x8] sm:$0xff] }
   0xb   :  { %115 = vmatmul.mubr.msk.bf16.vlgmr.msra.gmra.mrb[0].mxu0 %vm33_vm2, %v26_v9 }
  0xde   :  { %v71_v11 = vpop.f32.mrb[0].mxu0 }
  0xdf   :  { %v78_v13 = vadd.f32 %v71_v11, %v22_v10  ;;  %v116_v14 = vpop.f32.mrb[1].mxu0 }
  0xe0   :  { %v74_v15 = vpop.f32.mrb[2].mxu0 }
  0xe1   :  { %81 = vst.msk [vmem:[#allocation2] sm:$0xff] %vm19_vm0, %v78_v13  ;;  %v79_v16 = vadd.f32 %v74_v15, %v23_v12  ;;  %v117_v17 = vpop.f32.mrb[3].mxu0 }
  0xe3   :  { %82 = vst.msk [vmem:[#allocation2 + $0x8] sm:$0xff] %vm19_vm0, %v79_v16 }
  0xe8   :  { %v86_v19 = vld [vmem:[#allocation2] sm:$0xff] }
  0xe9   :  { %v95_v20 = vadd.f32 %v106_v18, %v86_v19 }
  0xea   :  { %v87_v21 = vld [vmem:[#allocation2 + $0x8] sm:$0xff] }
  0xeb   :  { %v97_v22 = vmax.f32 %v95_v20, 0.0  ;;  %v96_v23 = vadd.f32 %v106_v18, %v87_v21 }
  0xed   :  { %99 = vst.msk [vmem:[%s178_s3] sm:$0xff] %vm19_vm0, %v97_v22  ;;  %v98_v24 = vmax.f32 %v96_v23, 0.0 }
  0xef   :  { %100 = vst.msk [vmem:[%s178_s3 + $0x8] sm:$0xff] %vm19_vm0, %v98_v24 }

</bundles_post_ra>
